<compile_context>
chip_gen: v7x
topology: tpu7x:2x2x1
jax: 0.10.0
libtpu: 0.0.40
codegen_flags: <defaults>
</compile_context>

<pallas_src>
import jax
import jax.numpy as jnp
from jax import lax
from jax.experimental import pallas as pl
from jax.experimental.pallas import tpu as pltpu


def _round_up(n, m):
    return ((n + m - 1) // m) * m


# ------------------------------ fused kernel ---------------------------------
def _make_fused_kernel(S, BP, Din, H, O):
    G = 4 * H

    def _row_ds(t):
        start = t * BP
        if not isinstance(start, int):
            start = pl.multiple_of(start, BP)      # aligned 8-sublane tile start
        return pl.ds(start, BP)

    def kernel(x_ref, wih0_ref, whh0_ref, b0_ref,
               wih1_ref, whh1_ref, b1_ref,
               wreg_ref, breg_ref,
               out_ref,
               gin0_ref):
        # ---- layer-0 input projection for ALL timesteps: one (S*BP,Din)x(Din,4H)
        # MXU matmul into the aligned gate slab (hoisted out of the recurrence).
        gin0_ref[...] = (
            jnp.dot(x_ref[...], wih0_ref[...], preferred_element_type=jnp.float32)
            + b0_ref[...]
        )

        # Loop-invariant operands, loaded once.
        whh0 = whh0_ref[...]
        whh1 = whh1_ref[...]
        wih1 = wih1_ref[...]
        b1 = b1_ref[...]
        wreg = wreg_ref[...]
        breg = breg_ref[...]

        def cell(gates, c):
            # Single full-vreg sigmoid (4H == 128 lanes -> one EUP push).
            # g-gate pre-activations were pre-scaled by 2 at prep time, so
            # tanh(x) == 2*sigmoid(2x) - 1 is a cheap VALU fixup.
            sg = jax.nn.sigmoid(gates)
            i_g = sg[:, 0 * H:1 * H]
            f_g = sg[:, 1 * H:2 * H]
            g_g = 2.0 * sg[:, 2 * H:3 * H] - 1.0
            o_g = sg[:, 3 * H:4 * H]
            c_new = f_g * c + i_g * g_g
            h_new = o_g * jnp.tanh(c_new)
            return h_new, c_new

        def l0_step(t, h0, c0):
            gates0 = gin0_ref[_row_ds(t), :] + jnp.dot(
                h0, whh0, preferred_element_type=jnp.float32)
            h0n, c0n = cell(gates0, c0)
            # Layer-1 input projection for time t, available for the next super-step.
            gin1 = jnp.dot(h0n, wih1, preferred_element_type=jnp.float32) + b1
            return h0n, c0n, gin1

        def l1_step(s, gin1, h1, c1):
            gates1 = gin1 + jnp.dot(h1, whh1, preferred_element_type=jnp.float32)
            h1n, c1n = cell(gates1, c1)
            # Regression head fused into the recurrence step.
            if O == 1:
                o_t = jnp.sum(h1n * wreg, axis=-1, keepdims=True) + breg
            else:
                o_t = jnp.dot(h1n, wreg, preferred_element_type=jnp.float32) + breg
            out_ref[_row_ds(s), :] = o_t.astype(out_ref.dtype)
            return h1n, c1n

        zeros = jnp.zeros((BP, H), jnp.float32)

        # ---- wavefront prologue: layer-0 step 0
        h0, c0, gin1 = l0_step(0, zeros, zeros)
        h1, c1 = zeros, zeros

        # ---- wavefront steady state: super-step t = {layer-1 step t-1, layer-0
        # step t}; both bodies depend only on the previous carry, so they pipeline.
        def superstep(t, carry):
            h0, c0, h1, c1, gin1 = carry
            h1n, c1n = l1_step(t - 1, gin1, h1, c1)
            h0n, c0n, gin1n = l0_step(t, h0, c0)
            return (h0n, c0n, h1n, c1n, gin1n)

        h0, c0, h1, c1, gin1 = lax.fori_loop(
            1, S, superstep, (h0, c0, h1, c1, gin1), unroll=True)

        # ---- wavefront epilogue: layer-1 step S-1
        l1_step(S - 1, gin1, h1, c1)

    return kernel


def lstm_reg_fused(x, prep):
    """x: (S, B, Din) -> (S, B, O), fused 2-layer LSTM + Linear head."""
    S, B, Din = x.shape
    H = prep["whh0_t"].shape[0]
    O = prep["breg"].shape[-1]
    G = 4 * H
    BP = _round_up(max(B, 8), 8)          # pad batch rows to full 8-sublane tiles

    # Layout plumbing (not compute hoisting): zero-pad batch to BP rows so every
    # per-timestep slab access in-kernel is a full aligned (8, 128) tile.
    x_pad = jnp.zeros((S, BP, Din), x.dtype).at[:, :B, :].set(x)
    x2d = x_pad.reshape(S * BP, Din)

    def full(shape):
        return pl.BlockSpec(shape, lambda: (0,) * len(shape))

    kernel = _make_fused_kernel(S, BP, Din, H, O)
    out2d = pl.pallas_call(
        kernel,
        out_shape=jax.ShapeDtypeStruct((S * BP, O), x.dtype),
        in_specs=[
            full((S * BP, Din)),
            full((Din, G)), full((H, G)), full((1, G)),
            full((H, G)), full((H, G)), full((1, G)),
            full(tuple(prep["wreg"].shape)), full((1, O)),
        ],
        out_specs=full((S * BP, O)),
        scratch_shapes=[
            pltpu.VMEM((S * BP, G), jnp.float32),   # layer-0 gate slab (aligned)
        ],
        # TODO(synk): if S*B grows large, tile the time axis with a grid
        # ("arbitrary") + pipelined slabs instead of keeping the whole gate slab
        # resident (v7x VMEM is only 64 MiB physical / 32 MiB scoped default).
    )(x2d,
      prep["wih0_t"], prep["whh0_t"], prep["b0"],
      prep["wih1_t"], prep["whh1_t"], prep["b1"],
      prep["wreg"], prep["breg"])
    return out2d.reshape(S, BP, O)[:, :B, :]


# --------------------------- one-time weight prep -----------------------------
def prepare_params(params):
    """Transpose weights, fuse biases, and fold the tanh->sigmoid rescale once."""
    l0, l1 = params["lstm"]
    O, H = params["reg_w"].shape
    G = 4 * H

    def prep_layer(layer):
        w_ih_t = jnp.transpose(layer["w_ih"])                    # (Din, 4H)
        w_hh_t = jnp.transpose(layer["w_hh"])                    # (H, 4H)
        b = (layer["b_ih"] + layer["b_hh"]).reshape(1, G)
        # Fold tanh(x) = 2*sigmoid(2x) - 1 into the g-gate (2H:3H) pre-activation.
        scale = jnp.ones((1, G), jnp.float32).at[:, 2 * H:3 * H].set(2.0)
        return w_ih_t * scale, w_hh_t * scale, b * scale

    wih0_t, whh0_t, b0 = prep_layer(l0)
    wih1_t, whh1_t, b1 = prep_layer(l1)
    prep = {
        "wih0_t": wih0_t, "whh0_t": whh0_t, "b0": b0,
        "wih1_t": wih1_t, "whh1_t": whh1_t, "b1": b1,
        "breg": params["reg_b"].reshape(1, O),
    }
    if O == 1:
        prep["wreg"] = params["reg_w"].reshape(1, H)              # VPU head row
    else:
        prep["wreg"] = jnp.transpose(params["reg_w"])             # (H, O)
    return jax.tree_util.tree_map(lambda a: a.astype(jnp.float32), prep)


@jax.jit
def lstm_reg_forward(x, prep):
    """Equivalent of lstm_reg.forward: (S, B, input_size) -> (S, B, output_size)."""
    return lstm_reg_fused(x, prep)


# ------------------------------ pure-JAX reference ----------------------------
def _ref_forward(x, params):
    h_seq = x
    for layer in params["lstm"]:
        w_ih, w_hh = layer["w_ih"], layer["w_hh"]
        b = layer["b_ih"] + layer["b_hh"]
        H = w_hh.shape[1]
        B = x.shape[1]

        def step(carry, x_t):
            h, c = carry
            gates = x_t @ w_ih.T + h @ w_hh.T + b
            i = jax.nn.sigmoid(gates[:, 0 * H:1 * H])
            f = jax.nn.sigmoid(gates[:, 1 * H:2 * H])
            g = jnp.tanh(gates[:, 2 * H:3 * H])
            o = jax.nn.sigmoid(gates[:, 3 * H:4 * H])
            c = f * c + i * g
            h = o * jnp.tanh(c)
            return (h, c), h

        init = (jnp.zeros((B, H), jnp.float32), jnp.zeros((B, H), jnp.float32))
        _, h_seq = jax.lax.scan(step, init, h_seq)
    S, B, H = h_seq.shape
    out = h_seq.reshape(S * B, H) @ params["reg_w"].T + params["reg_b"]
    return out.reshape(S, B, -1)


# ------------------------------------ main ------------------------------------
def _init_params(key, input_size, hidden_size, output_size, num_layers):
    bound = 1.0 / jnp.sqrt(hidden_size)
    params = {"lstm": []}
    for layer in range(num_layers):
        d_in = input_size if layer == 0 else hidden_size
        key, k1, k2, k3, k4 = jax.random.split(key, 5)
        params["lstm"].append({
            "w_ih": jax.random.uniform(k1, (4 * hidden_size, d_in),
                                       jnp.float32, -bound, bound),
            "w_hh": jax.random.uniform(k2, (4 * hidden_size, hidden_size),
                                       jnp.float32, -bound, bound),
            "b_ih": jax.random.uniform(k3, (4 * hidden_size,),
                                       jnp.float32, -bound, bound),
            "b_hh": jax.random.uniform(k4, (4 * hidden_size,),
                                       jnp.float32, -bound, bound),
        })
    key, k5, k6 = jax.random.split(key, 3)
    lb = 1.0 / jnp.sqrt(hidden_size)
    params["reg_w"] = jax.random.uniform(k5, (output_size, hidden_size),
                                         jnp.float32, -lb, lb)
    params["reg_b"] = jax.random.uniform(k6, (output_size,),
                                         jnp.float32, -lb, lb)
    return params


if __name__ == "__main__":
    SEQ, BATCH = 8, 2
    INPUT_SIZE, HIDDEN_SIZE, OUTPUT_SIZE, NUM_LAYERS = 16, 32, 1, 2

    key = jax.random.PRNGKey(0)
    key, kx = jax.random.split(key)
    x = jax.random.normal(kx, (SEQ, BATCH, INPUT_SIZE), jnp.float32)
    params = _init_params(key, INPUT_SIZE, HIDDEN_SIZE, OUTPUT_SIZE, NUM_LAYERS)
    prep = prepare_params(params)

    out = lstm_reg_forward(x, prep)
    out = jax.block_until_ready(out)

    ref = _ref_forward(x, params)
    assert out.shape == (SEQ, BATCH, OUTPUT_SIZE), out.shape
    assert jnp.allclose(out, ref, atol=1e-4, rtol=1e-4), "mismatch vs reference"

    print("KERNEL_OK")
</pallas_src>

<mosaic_0001>
module attributes {stable_mosaic.version = 11 : i64} {
  func.func @kernel(%arg0: memref<64x16xf32, #tpu.memory_space<vmem>>, %arg1: memref<16x128xf32, #tpu.memory_space<vmem>>, %arg2: memref<32x128xf32, #tpu.memory_space<vmem>>, %arg3: memref<1x128xf32, #tpu.memory_space<vmem>>, %arg4: memref<32x128xf32, #tpu.memory_space<vmem>>, %arg5: memref<32x128xf32, #tpu.memory_space<vmem>>, %arg6: memref<1x128xf32, #tpu.memory_space<vmem>>, %arg7: memref<1x32xf32, #tpu.memory_space<vmem>>, %arg8: memref<1x1xf32, #tpu.memory_space<vmem>>, %arg9: memref<64x1xf32, #tpu.memory_space<vmem>>, %arg10: memref<64x128xf32, #tpu.memory_space<vmem>>) attributes {dimension_semantics = [], scalar_prefetch = 0 : i64, scratch_operands = 1 : i64, tpu.core_type = #tpu.core_type<tc>} {
    %c0 = arith.constant 0 : index
    %c0_0 = arith.constant 0 : index
    %0 = vector.load %arg0[%c0, %c0_0] : memref<64x16xf32, #tpu.memory_space<vmem>>, vector<64x16xf32>
    %c0_1 = arith.constant 0 : index
    %c0_2 = arith.constant 0 : index
    %1 = vector.load %arg1[%c0_1, %c0_2] : memref<16x128xf32, #tpu.memory_space<vmem>>, vector<16x128xf32>
    %cst = arith.constant dense<0.000000e+00> : vector<64x128xf32>
    %2 = tpu.matmul %0, %1, %cst {dimension_numbers = #tpu.dot_dimension_numbers<[1], [0], [0], [1], [0, 0, 1, 1], [], []>} : vector<64x16xf32>, vector<16x128xf32>, vector<64x128xf32> -> vector<64x128xf32>
    %c0_3 = arith.constant 0 : index
    %c0_4 = arith.constant 0 : index
    %3 = vector.load %arg3[%c0_3, %c0_4] : memref<1x128xf32, #tpu.memory_space<vmem>>, vector<1x128xf32>
    %4 = vector.broadcast %3 : vector<1x128xf32> to vector<64x128xf32>
    %5 = arith.addf %2, %4 : vector<64x128xf32>
    %c0_5 = arith.constant 0 : index
    %c0_6 = arith.constant 0 : index
    %6 = vector.load %arg10[%c0_5, %c0_6] : memref<64x128xf32, #tpu.memory_space<vmem>>, vector<64x128xf32>
    tpu.vector_store %arg10[%c0_5, %c0_6], %5 {strides = array<i32>} : memref<64x128xf32, #tpu.memory_space<vmem>>, vector<64x128xf32>,
    %c0_7 = arith.constant 0 : index
    %c0_8 = arith.constant 0 : index
    %7 = vector.load %arg2[%c0_7, %c0_8] : memref<32x128xf32, #tpu.memory_space<vmem>>, vector<32x128xf32>
    %c0_9 = arith.constant 0 : index
    %c0_10 = arith.constant 0 : index
    %8 = vector.load %arg5[%c0_9, %c0_10] : memref<32x128xf32, #tpu.memory_space<vmem>>, vector<32x128xf32>
    %c0_11 = arith.constant 0 : index
    %c0_12 = arith.constant 0 : index
    %9 = vector.load %arg4[%c0_11, %c0_12] : memref<32x128xf32, #tpu.memory_space<vmem>>, vector<32x128xf32>
    %c0_13 = arith.constant 0 : index
    %c0_14 = arith.constant 0 : index
    %10 = vector.load %arg6[%c0_13, %c0_14] : memref<1x128xf32, #tpu.memory_space<vmem>>, vector<1x128xf32>
    %c0_15 = arith.constant 0 : index
    %c0_16 = arith.constant 0 : index
    %11 = vector.load %arg7[%c0_15, %c0_16] : memref<1x32xf32, #tpu.memory_space<vmem>>, vector<1x32xf32>
    %c0_17 = arith.constant 0 : index
    %c0_18 = arith.constant 0 : index
    %12 = vector.load %arg8[%c0_17, %c0_18] : memref<1x1xf32, #tpu.memory_space<vmem>>, vector<1x1xf32>
    %cst_19 = arith.constant 0.000000e+00 : f32
    %13 = vector.broadcast %cst_19 : f32 to vector<8x32xf32>
    %c0_20 = arith.constant 0 : index
    %c0_21 = arith.constant 0 : index
    %14 = vector.load %arg10[%c0_20, %c0_21] : memref<64x128xf32, #tpu.memory_space<vmem>>, vector<8x128xf32>
    %cst_22 = arith.constant dense<0.000000e+00> : vector<8x128xf32>
    %15 = tpu.matmul %13, %7, %cst_22 {dimension_numbers = #tpu.dot_dimension_numbers<[1], [0], [0], [1], [0, 0, 1, 1], [], []>} : vector<8x32xf32>, vector<32x128xf32>, vector<8x128xf32> -> vector<8x128xf32>
    %16 = arith.addf %14, %15 : vector<8x128xf32>
    %17 = arith.negf %16 : vector<8x128xf32>
    %18 = math.exp %17 : vector<8x128xf32>
    %cst_23 = arith.constant 1.000000e+00 : f32
    %19 = vector.broadcast %cst_23 : f32 to vector<8x128xf32>
    %20 = arith.addf %19, %18 : vector<8x128xf32>
    %21 = arith.divf %19, %20 : vector<8x128xf32>
    %22 = vector.extract_strided_slice %21 {offsets = [0, 0], sizes = [8, 32], strides = [1, 1]} : vector<8x128xf32> to vector<8x32xf32>
    %23 = vector.extract_strided_slice %21 {offsets = [0, 32], sizes = [8, 32], strides = [1, 1]} : vector<8x128xf32> to vector<8x32xf32>
    %24 = vector.extract_strided_slice %21 {offsets = [0, 64], sizes = [8, 32], strides = [1, 1]} : vector<8x128xf32> to vector<8x32xf32>
    %cst_24 = arith.constant 2.000000e+00 : f32
    %25 = vector.broadcast %cst_24 : f32 to vector<8x32xf32>
    %26 = arith.mulf %25, %24 : vector<8x32xf32>
    %cst_25 = arith.constant 1.000000e+00 : f32
    %27 = vector.broadcast %cst_25 : f32 to vector<8x32xf32>
    %28 = arith.subf %26, %27 : vector<8x32xf32>
    %29 = vector.extract_strided_slice %21 {offsets = [0, 96], sizes = [8, 32], strides = [1, 1]} : vector<8x128xf32> to vector<8x32xf32>
    %30 = arith.mulf %23, %13 : vector<8x32xf32>
    %31 = arith.mulf %22, %28 : vector<8x32xf32>
    %32 = arith.addf %30, %31 : vector<8x32xf32>
    %33 = math.tanh %32 : vector<8x32xf32>
    %34 = arith.mulf %29, %33 : vector<8x32xf32>
    %cst_26 = arith.constant dense<0.000000e+00> : vector<8x128xf32>
    %35 = tpu.matmul %34, %9, %cst_26 {dimension_numbers = #tpu.dot_dimension_numbers<[1], [0], [0], [1], [0, 0, 1, 1], [], []>} : vector<8x32xf32>, vector<32x128xf32>, vector<8x128xf32> -> vector<8x128xf32>
    %36 = vector.broadcast %10 : vector<1x128xf32> to vector<8x128xf32>
    %37 = arith.addf %35, %36 : vector<8x128xf32>
    %c1_i32 = arith.constant 1 : i32
    %c1_i32_27 = arith.constant 1 : i32
    %38 = arith.subi %c1_i32, %c1_i32_27 : i32
    %cst_28 = arith.constant dense<0.000000e+00> : vector<8x128xf32>
    %39 = tpu.matmul %13, %8, %cst_28 {dimension_numbers = #tpu.dot_dimension_numbers<[1], [0], [0], [1], [0, 0, 1, 1], [], []>} : vector<8x32xf32>, vector<32x128xf32>, vector<8x128xf32> -> vector<8x128xf32>
    %40 = arith.addf %37, %39 : vector<8x128xf32>
    %41 = arith.negf %40 : vector<8x128xf32>
    %42 = math.exp %41 : vector<8x128xf32>
    %cst_29 = arith.constant 1.000000e+00 : f32
    %43 = vector.broadcast %cst_29 : f32 to vector<8x128xf32>
    %44 = arith.addf %43, %42 : vector<8x128xf32>
    %45 = arith.divf %43, %44 : vector<8x128xf32>
    %46 = vector.extract_strided_slice %45 {offsets = [0, 0], sizes = [8, 32], strides = [1, 1]} : vector<8x128xf32> to vector<8x32xf32>
    %47 = vector.extract_strided_slice %45 {offsets = [0, 32], sizes = [8, 32], strides = [1, 1]} : vector<8x128xf32> to vector<8x32xf32>
    %48 = vector.extract_strided_slice %45 {offsets = [0, 64], sizes = [8, 32], strides = [1, 1]} : vector<8x128xf32> to vector<8x32xf32>
    %cst_30 = arith.constant 2.000000e+00 : f32
    %49 = vector.broadcast %cst_30 : f32 to vector<8x32xf32>
    %50 = arith.mulf %49, %48 : vector<8x32xf32>
    %cst_31 = arith.constant 1.000000e+00 : f32
    %51 = vector.broadcast %cst_31 : f32 to vector<8x32xf32>
    %52 = arith.subf %50, %51 : vector<8x32xf32>
    %53 = vector.extract_strided_slice %45 {offsets = [0, 96], sizes = [8, 32], strides = [1, 1]} : vector<8x128xf32> to vector<8x32xf32>
    %54 = arith.mulf %47, %13 : vector<8x32xf32>
    %55 = arith.mulf %46, %52 : vector<8x32xf32>
    %56 = arith.addf %54, %55 : vector<8x32xf32>
    %57 = math.tanh %56 : vector<8x32xf32>
    %58 = arith.mulf %53, %57 : vector<8x32xf32>
    %59 = vector.broadcast %11 : vector<1x32xf32> to vector<8x32xf32>
    %60 = arith.mulf %58, %59 : vector<8x32xf32>
    %cst_32 = arith.constant dense<0.000000e+00> : vector<8xf32>
    %61 = vector.multi_reduction <add>, %60, %cst_32 [1] : vector<8x32xf32> to vector<8xf32>
    %62 = vector.shape_cast %61 : vector<8xf32> to vector<8x1xf32>
    %63 = vector.broadcast %12 : vector<1x1xf32> to vector<8x1xf32>
    %64 = arith.addf %62, %63 : vector<8x1xf32>
    %c8_i32 = arith.constant 8 : i32
    %65 = arith.muli %38, %c8_i32 : i32
    %66 = tpu.assume_multiple %65, 8 : i32
    %67 = arith.index_cast %66 : i32 to index
    %c0_33 = arith.constant 0 : index
    %68 = vector.load %arg9[%67, %c0_33] : memref<64x1xf32, #tpu.memory_space<vmem>>, vector<8x1xf32>
    tpu.vector_store %arg9[%67, %c0_33], %64 {strides = array<i32>} : memref<64x1xf32, #tpu.memory_space<vmem>>, vector<8x1xf32>,
    %c8_i32_34 = arith.constant 8 : i32
    %69 = arith.muli %c1_i32, %c8_i32_34 : i32
    %70 = tpu.assume_multiple %69, 8 : i32
    %71 = arith.index_cast %70 : i32 to index
    %c0_35 = arith.constant 0 : index
    %72 = vector.load %arg10[%71, %c0_35] : memref<64x128xf32, #tpu.memory_space<vmem>>, vector<8x128xf32>
    %cst_36 = arith.constant dense<0.000000e+00> : vector<8x128xf32>
    %73 = tpu.matmul %34, %7, %cst_36 {dimension_numbers = #tpu.dot_dimension_numbers<[1], [0], [0], [1], [0, 0, 1, 1], [], []>} : vector<8x32xf32>, vector<32x128xf32>, vector<8x128xf32> -> vector<8x128xf32>
    %74 = arith.addf %72, %73 : vector<8x128xf32>
    %75 = arith.negf %74 : vector<8x128xf32>
    %76 = math.exp %75 : vector<8x128xf32>
    %cst_37 = arith.constant 1.000000e+00 : f32
    %77 = vector.broadcast %cst_37 : f32 to vector<8x128xf32>
    %78 = arith.addf %77, %76 : vector<8x128xf32>
    %79 = arith.divf %77, %78 : vector<8x128xf32>
    %80 = vector.extract_strided_slice %79 {offsets = [0, 0], sizes = [8, 32], strides = [1, 1]} : vector<8x128xf32> to vector<8x32xf32>
    %81 = vector.extract_strided_slice %79 {offsets = [0, 32], sizes = [8, 32], strides = [1, 1]} : vector<8x128xf32> to vector<8x32xf32>
    %82 = vector.extract_strided_slice %79 {offsets = [0, 64], sizes = [8, 32], strides = [1, 1]} : vector<8x128xf32> to vector<8x32xf32>
    %cst_38 = arith.constant 2.000000e+00 : f32
    %83 = vector.broadcast %cst_38 : f32 to vector<8x32xf32>
    %84 = arith.mulf %83, %82 : vector<8x32xf32>
    %cst_39 = arith.constant 1.000000e+00 : f32
    %85 = vector.broadcast %cst_39 : f32 to vector<8x32xf32>
    %86 = arith.subf %84, %85 : vector<8x32xf32>
    %87 = vector.extract_strided_slice %79 {offsets = [0, 96], sizes = [8, 32], strides = [1, 1]} : vector<8x128xf32> to vector<8x32xf32>
    %88 = arith.mulf %81, %32 : vector<8x32xf32>
    %89 = arith.mulf %80, %86 : vector<8x32xf32>
    %90 = arith.addf %88, %89 : vector<8x32xf32>
    %91 = math.tanh %90 : vector<8x32xf32>
    %92 = arith.mulf %87, %91 : vector<8x32xf32>
    %cst_40 = arith.constant dense<0.000000e+00> : vector<8x128xf32>
    %93 = tpu.matmul %92, %9, %cst_40 {dimension_numbers = #tpu.dot_dimension_numbers<[1], [0], [0], [1], [0, 0, 1, 1], [], []>} : vector<8x32xf32>, vector<32x128xf32>, vector<8x128xf32> -> vector<8x128xf32>
    %94 = vector.broadcast %10 : vector<1x128xf32> to vector<8x128xf32>
    %95 = arith.addf %93, %94 : vector<8x128xf32>
    %c2_i32 = arith.constant 2 : i32
    %c1_i32_41 = arith.constant 1 : i32
    %96 = arith.subi %c2_i32, %c1_i32_41 : i32
    %cst_42 = arith.constant dense<0.000000e+00> : vector<8x128xf32>
    %97 = tpu.matmul %58, %8, %cst_42 {dimension_numbers = #tpu.dot_dimension_numbers<[1], [0], [0], [1], [0, 0, 1, 1], [], []>} : vector<8x32xf32>, vector<32x128xf32>, vector<8x128xf32> -> vector<8x128xf32>
    %98 = arith.addf %95, %97 : vector<8x128xf32>
    %99 = arith.negf %98 : vector<8x128xf32>
    %100 = math.exp %99 : vector<8x128xf32>
    %cst_43 = arith.constant 1.000000e+00 : f32
    %101 = vector.broadcast %cst_43 : f32 to vector<8x128xf32>
    %102 = arith.addf %101, %100 : vector<8x128xf32>
    %103 = arith.divf %101, %102 : vector<8x128xf32>
    %104 = vector.extract_strided_slice %103 {offsets = [0, 0], sizes = [8, 32], strides = [1, 1]} : vector<8x128xf32> to vector<8x32xf32>
    %105 = vector.extract_strided_slice %103 {offsets = [0, 32], sizes = [8, 32], strides = [1, 1]} : vector<8x128xf32> to vector<8x32xf32>
    %106 = vector.extract_strided_slice %103 {offsets = [0, 64], sizes = [8, 32], strides = [1, 1]} : vector<8x128xf32> to vector<8x32xf32>
    %cst_44 = arith.constant 2.000000e+00 : f32
    %107 = vector.broadcast %cst_44 : f32 to vector<8x32xf32>
    %108 = arith.mulf %107, %106 : vector<8x32xf32>
    %cst_45 = arith.constant 1.000000e+00 : f32
    %109 = vector.broadcast %cst_45 : f32 to vector<8x32xf32>
    %110 = arith.subf %108, %109 : vector<8x32xf32>
    %111 = vector.extract_strided_slice %103 {offsets = [0, 96], sizes = [8, 32], strides = [1, 1]} : vector<8x128xf32> to vector<8x32xf32>
    %112 = arith.mulf %105, %56 : vector<8x32xf32>
    %113 = arith.mulf %104, %110 : vector<8x32xf32>
    %114 = arith.addf %112, %113 : vector<8x32xf32>
    %115 = math.tanh %114 : vector<8x32xf32>
    %116 = arith.mulf %111, %115 : vector<8x32xf32>
    %117 = vector.broadcast %11 : vector<1x32xf32> to vector<8x32xf32>
    %118 = arith.mulf %116, %117 : vector<8x32xf32>
    %cst_46 = arith.constant dense<0.000000e+00> : vector<8xf32>
    %119 = vector.multi_reduction <add>, %118, %cst_46 [1] : vector<8x32xf32> to vector<8xf32>
    %120 = vector.shape_cast %119 : vector<8xf32> to vector<8x1xf32>
    %121 = vector.broadcast %12 : vector<1x1xf32> to vector<8x1xf32>
    %122 = arith.addf %120, %121 : vector<8x1xf32>
    %c8_i32_47 = arith.constant 8 : i32
    %123 = arith.muli %96, %c8_i32_47 : i32
    %124 = tpu.assume_multiple %123, 8 : i32
    %125 = arith.index_cast %124 : i32 to index
    %c0_48 = arith.constant 0 : index
    %126 = vector.load %arg9[%125, %c0_48] : memref<64x1xf32, #tpu.memory_space<vmem>>, vector<8x1xf32>
    tpu.vector_store %arg9[%125, %c0_48], %122 {strides = array<i32>} : memref<64x1xf32, #tpu.memory_space<vmem>>, vector<8x1xf32>,
    %c8_i32_49 = arith.constant 8 : i32
    %127 = arith.muli %c2_i32, %c8_i32_49 : i32
    %128 = tpu.assume_multiple %127, 8 : i32
    %129 = arith.index_cast %128 : i32 to index
    %c0_50 = arith.constant 0 : index
    %130 = vector.load %arg10[%129, %c0_50] : memref<64x128xf32, #tpu.memory_space<vmem>>, vector<8x128xf32>
    %cst_51 = arith.constant dense<0.000000e+00> : vector<8x128xf32>
    %131 = tpu.matmul %92, %7, %cst_51 {dimension_numbers = #tpu.dot_dimension_numbers<[1], [0], [0], [1], [0, 0, 1, 1], [], []>} : vector<8x32xf32>, vector<32x128xf32>, vector<8x128xf32> -> vector<8x128xf32>
    %132 = arith.addf %130, %131 : vector<8x128xf32>
    %133 = arith.negf %132 : vector<8x128xf32>
    %134 = math.exp %133 : vector<8x128xf32>
    %cst_52 = arith.constant 1.000000e+00 : f32
    %135 = vector.broadcast %cst_52 : f32 to vector<8x128xf32>
    %136 = arith.addf %135, %134 : vector<8x128xf32>
    %137 = arith.divf %135, %136 : vector<8x128xf32>
    %138 = vector.extract_strided_slice %137 {offsets = [0, 0], sizes = [8, 32], strides = [1, 1]} : vector<8x128xf32> to vector<8x32xf32>
    %139 = vector.extract_strided_slice %137 {offsets = [0, 32], sizes = [8, 32], strides = [1, 1]} : vector<8x128xf32> to vector<8x32xf32>
    %140 = vector.extract_strided_slice %137 {offsets = [0, 64], sizes = [8, 32], strides = [1, 1]} : vector<8x128xf32> to vector<8x32xf32>
    %cst_53 = arith.constant 2.000000e+00 : f32
    %141 = vector.broadcast %cst_53 : f32 to vector<8x32xf32>
    %142 = arith.mulf %141, %140 : vector<8x32xf32>
    %cst_54 = arith.constant 1.000000e+00 : f32
    %143 = vector.broadcast %cst_54 : f32 to vector<8x32xf32>
    %144 = arith.subf %142, %143 : vector<8x32xf32>
    %145 = vector.extract_strided_slice %137 {offsets = [0, 96], sizes = [8, 32], strides = [1, 1]} : vector<8x128xf32> to vector<8x32xf32>
    %146 = arith.mulf %139, %90 : vector<8x32xf32>
    %147 = arith.mulf %138, %144 : vector<8x32xf32>
    %148 = arith.addf %146, %147 : vector<8x32xf32>
    %149 = math.tanh %148 : vector<8x32xf32>
    %150 = arith.mulf %145, %149 : vector<8x32xf32>
    %cst_55 = arith.constant dense<0.000000e+00> : vector<8x128xf32>
    %151 = tpu.matmul %150, %9, %cst_55 {dimension_numbers = #tpu.dot_dimension_numbers<[1], [0], [0], [1], [0, 0, 1, 1], [], []>} : vector<8x32xf32>, vector<32x128xf32>, vector<8x128xf32> -> vector<8x128xf32>
    %152 = vector.broadcast %10 : vector<1x128xf32> to vector<8x128xf32>
    %153 = arith.addf %151, %152 : vector<8x128xf32>
    %c3_i32 = arith.constant 3 : i32
    %c1_i32_56 = arith.constant 1 : i32
    %154 = arith.subi %c3_i32, %c1_i32_56 : i32
    %cst_57 = arith.constant dense<0.000000e+00> : vector<8x128xf32>
    %155 = tpu.matmul %116, %8, %cst_57 {dimension_numbers = #tpu.dot_dimension_numbers<[1], [0], [0], [1], [0, 0, 1, 1], [], []>} : vector<8x32xf32>, vector<32x128xf32>, vector<8x128xf32> -> vector<8x128xf32>
    %156 = arith.addf %153, %155 : vector<8x128xf32>
    %157 = arith.negf %156 : vector<8x128xf32>
    %158 = math.exp %157 : vector<8x128xf32>
    %cst_58 = arith.constant 1.000000e+00 : f32
    %159 = vector.broadcast %cst_58 : f32 to vector<8x128xf32>
    %160 = arith.addf %159, %158 : vector<8x128xf32>
    %161 = arith.divf %159, %160 : vector<8x128xf32>
    %162 = vector.extract_strided_slice %161 {offsets = [0, 0], sizes = [8, 32], strides = [1, 1]} : vector<8x128xf32> to vector<8x32xf32>
    %163 = vector.extract_strided_slice %161 {offsets = [0, 32], sizes = [8, 32], strides = [1, 1]} : vector<8x128xf32> to vector<8x32xf32>
    %164 = vector.extract_strided_slice %161 {offsets = [0, 64], sizes = [8, 32], strides = [1, 1]} : vector<8x128xf32> to vector<8x32xf32>
    %cst_59 = arith.constant 2.000000e+00 : f32
    %165 = vector.broadcast %cst_59 : f32 to vector<8x32xf32>
    %166 = arith.mulf %165, %164 : vector<8x32xf32>
    %cst_60 = arith.constant 1.000000e+00 : f32
    %167 = vector.broadcast %cst_60 : f32 to vector<8x32xf32>
    %168 = arith.subf %166, %167 : vector<8x32xf32>
    %169 = vector.extract_strided_slice %161 {offsets = [0, 96], sizes = [8, 32], strides = [1, 1]} : vector<8x128xf32> to vector<8x32xf32>
    %170 = arith.mulf %163, %114 : vector<8x32xf32>
    %171 = arith.mulf %162, %168 : vector<8x32xf32>
    %172 = arith.addf %170, %171 : vector<8x32xf32>
    %173 = math.tanh %172 : vector<8x32xf32>
    %174 = arith.mulf %169, %173 : vector<8x32xf32>
    %175 = vector.broadcast %11 : vector<1x32xf32> to vector<8x32xf32>
    %176 = arith.mulf %174, %175 : vector<8x32xf32>
    %cst_61 = arith.constant dense<0.000000e+00> : vector<8xf32>
    %177 = vector.multi_reduction <add>, %176, %cst_61 [1] : vector<8x32xf32> to vector<8xf32>
    %178 = vector.shape_cast %177 : vector<8xf32> to vector<8x1xf32>
    %179 = vector.broadcast %12 : vector<1x1xf32> to vector<8x1xf32>
    %180 = arith.addf %178, %179 : vector<8x1xf32>
    %c8_i32_62 = arith.constant 8 : i32
    %181 = arith.muli %154, %c8_i32_62 : i32
    %182 = tpu.assume_multiple %181, 8 : i32
    %183 = arith.index_cast %182 : i32 to index
    %c0_63 = arith.constant 0 : index
    %184 = vector.load %arg9[%183, %c0_63] : memref<64x1xf32, #tpu.memory_space<vmem>>, vector<8x1xf32>
    tpu.vector_store %arg9[%183, %c0_63], %180 {strides = array<i32>} : memref<64x1xf32, #tpu.memory_space<vmem>>, vector<8x1xf32>,
    %c8_i32_64 = arith.constant 8 : i32
    %185 = arith.muli %c3_i32, %c8_i32_64 : i32
    %186 = tpu.assume_multiple %185, 8 : i32
    %187 = arith.index_cast %186 : i32 to index
    %c0_65 = arith.constant 0 : index
    %188 = vector.load %arg10[%187, %c0_65] : memref<64x128xf32, #tpu.memory_space<vmem>>, vector<8x128xf32>
    %cst_66 = arith.constant dense<0.000000e+00> : vector<8x128xf32>
    %189 = tpu.matmul %150, %7, %cst_66 {dimension_numbers = #tpu.dot_dimension_numbers<[1], [0], [0], [1], [0, 0, 1, 1], [], []>} : vector<8x32xf32>, vector<32x128xf32>, vector<8x128xf32> -> vector<8x128xf32>
    %190 = arith.addf %188, %189 : vector<8x128xf32>
    %191 = arith.negf %190 : vector<8x128xf32>
    %192 = math.exp %191 : vector<8x128xf32>
    %cst_67 = arith.constant 1.000000e+00 : f32
    %193 = vector.broadcast %cst_67 : f32 to vector<8x128xf32>
    %194 = arith.addf %193, %192 : vector<8x128xf32>
    %195 = arith.divf %193, %194 : vector<8x128xf32>
    %196 = vector.extract_strided_slice %195 {offsets = [0, 0], sizes = [8, 32], strides = [1, 1]} : vector<8x128xf32> to vector<8x32xf32>
    %197 = vector.extract_strided_slice %195 {offsets = [0, 32], sizes = [8, 32], strides = [1, 1]} : vector<8x128xf32> to vector<8x32xf32>
    %198 = vector.extract_strided_slice %195 {offsets = [0, 64], sizes = [8, 32], strides = [1, 1]} : vector<8x128xf32> to vector<8x32xf32>
    %cst_68 = arith.constant 2.000000e+00 : f32
    %199 = vector.broadcast %cst_68 : f32 to vector<8x32xf32>
    %200 = arith.mulf %199, %198 : vector<8x32xf32>
    %cst_69 = arith.constant 1.000000e+00 : f32
    %201 = vector.broadcast %cst_69 : f32 to vector<8x32xf32>
    %202 = arith.subf %200, %201 : vector<8x32xf32>
    %203 = vector.extract_strided_slice %195 {offsets = [0, 96], sizes = [8, 32], strides = [1, 1]} : vector<8x128xf32> to vector<8x32xf32>
    %204 = arith.mulf %197, %148 : vector<8x32xf32>
    %205 = arith.mulf %196, %202 : vector<8x32xf32>
    %206 = arith.addf %204, %205 : vector<8x32xf32>
    %207 = math.tanh %206 : vector<8x32xf32>
    %208 = arith.mulf %203, %207 : vector<8x32xf32>
    %cst_70 = arith.constant dense<0.000000e+00> : vector<8x128xf32>
    %209 = tpu.matmul %208, %9, %cst_70 {dimension_numbers = #tpu.dot_dimension_numbers<[1], [0], [0], [1], [0, 0, 1, 1], [], []>} : vector<8x32xf32>, vector<32x128xf32>, vector<8x128xf32> -> vector<8x128xf32>
    %210 = vector.broadcast %10 : vector<1x128xf32> to vector<8x128xf32>
    %211 = arith.addf %209, %210 : vector<8x128xf32>
    %c4_i32 = arith.constant 4 : i32
    %c1_i32_71 = arith.constant 1 : i32
    %212 = arith.subi %c4_i32, %c1_i32_71 : i32
    %cst_72 = arith.constant dense<0.000000e+00> : vector<8x128xf32>
    %213 = tpu.matmul %174, %8, %cst_72 {dimension_numbers = #tpu.dot_dimension_numbers<[1], [0], [0], [1], [0, 0, 1, 1], [], []>} : vector<8x32xf32>, vector<32x128xf32>, vector<8x128xf32> -> vector<8x128xf32>
    %214 = arith.addf %211, %213 : vector<8x128xf32>
    %215 = arith.negf %214 : vector<8x128xf32>
    %216 = math.exp %215 : vector<8x128xf32>
    %cst_73 = arith.constant 1.000000e+00 : f32
    %217 = vector.broadcast %cst_73 : f32 to vector<8x128xf32>
    %218 = arith.addf %217, %216 : vector<8x128xf32>
    %219 = arith.divf %217, %218 : vector<8x128xf32>
    %220 = vector.extract_strided_slice %219 {offsets = [0, 0], sizes = [8, 32], strides = [1, 1]} : vector<8x128xf32> to vector<8x32xf32>
    %221 = vector.extract_strided_slice %219 {offsets = [0, 32], sizes = [8, 32], strides = [1, 1]} : vector<8x128xf32> to vector<8x32xf32>
    %222 = vector.extract_strided_slice %219 {offsets = [0, 64], sizes = [8, 32], strides = [1, 1]} : vector<8x128xf32> to vector<8x32xf32>
    %cst_74 = arith.constant 2.000000e+00 : f32
    %223 = vector.broadcast %cst_74 : f32 to vector<8x32xf32>
    %224 = arith.mulf %223, %222 : vector<8x32xf32>
    %cst_75 = arith.constant 1.000000e+00 : f32
    %225 = vector.broadcast %cst_75 : f32 to vector<8x32xf32>
    %226 = arith.subf %224, %225 : vector<8x32xf32>
    %227 = vector.extract_strided_slice %219 {offsets = [0, 96], sizes = [8, 32], strides = [1, 1]} : vector<8x128xf32> to vector<8x32xf32>
    %228 = arith.mulf %221, %172 : vector<8x32xf32>
    %229 = arith.mulf %220, %226 : vector<8x32xf32>
    %230 = arith.addf %228, %229 : vector<8x32xf32>
    %231 = math.tanh %230 : vector<8x32xf32>
    %232 = arith.mulf %227, %231 : vector<8x32xf32>
    %233 = vector.broadcast %11 : vector<1x32xf32> to vector<8x32xf32>
    %234 = arith.mulf %232, %233 : vector<8x32xf32>
    %cst_76 = arith.constant dense<0.000000e+00> : vector<8xf32>
    %235 = vector.multi_reduction <add>, %234, %cst_76 [1] : vector<8x32xf32> to vector<8xf32>
    %236 = vector.shape_cast %235 : vector<8xf32> to vector<8x1xf32>
    %237 = vector.broadcast %12 : vector<1x1xf32> to vector<8x1xf32>
    %238 = arith.addf %236, %237 : vector<8x1xf32>
    %c8_i32_77 = arith.constant 8 : i32
    %239 = arith.muli %212, %c8_i32_77 : i32
    %240 = tpu.assume_multiple %239, 8 : i32
    %241 = arith.index_cast %240 : i32 to index
    %c0_78 = arith.constant 0 : index
    %242 = vector.load %arg9[%241, %c0_78] : memref<64x1xf32, #tpu.memory_space<vmem>>, vector<8x1xf32>
    tpu.vector_store %arg9[%241, %c0_78], %238 {strides = array<i32>} : memref<64x1xf32, #tpu.memory_space<vmem>>, vector<8x1xf32>,
    %c8_i32_79 = arith.constant 8 : i32
    %243 = arith.muli %c4_i32, %c8_i32_79 : i32
    %244 = tpu.assume_multiple %243, 8 : i32
    %245 = arith.index_cast %244 : i32 to index
    %c0_80 = arith.constant 0 : index
    %246 = vector.load %arg10[%245, %c0_80] : memref<64x128xf32, #tpu.memory_space<vmem>>, vector<8x128xf32>
    %cst_81 = arith.constant dense<0.000000e+00> : vector<8x128xf32>
    %247 = tpu.matmul %208, %7, %cst_81 {dimension_numbers = #tpu.dot_dimension_numbers<[1], [0], [0], [1], [0, 0, 1, 1], [], []>} : vector<8x32xf32>, vector<32x128xf32>, vector<8x128xf32> -> vector<8x128xf32>
    %248 = arith.addf %246, %247 : vector<8x128xf32>
    %249 = arith.negf %248 : vector<8x128xf32>
    %250 = math.exp %249 : vector<8x128xf32>
    %cst_82 = arith.constant 1.000000e+00 : f32
    %251 = vector.broadcast %cst_82 : f32 to vector<8x128xf32>
    %252 = arith.addf %251, %250 : vector<8x128xf32>
    %253 = arith.divf %251, %252 : vector<8x128xf32>
    %254 = vector.extract_strided_slice %253 {offsets = [0, 0], sizes = [8, 32], strides = [1, 1]} : vector<8x128xf32> to vector<8x32xf32>
    %255 = vector.extract_strided_slice %253 {offsets = [0, 32], sizes = [8, 32], strides = [1, 1]} : vector<8x128xf32> to vector<8x32xf32>
    %256 = vector.extract_strided_slice %253 {offsets = [0, 64], sizes = [8, 32], strides = [1, 1]} : vector<8x128xf32> to vector<8x32xf32>
    %cst_83 = arith.constant 2.000000e+00 : f32
    %257 = vector.broadcast %cst_83 : f32 to vector<8x32xf32>
    %258 = arith.mulf %257, %256 : vector<8x32xf32>
    %cst_84 = arith.constant 1.000000e+00 : f32
    %259 = vector.broadcast %cst_84 : f32 to vector<8x32xf32>
    %260 = arith.subf %258, %259 : vector<8x32xf32>
    %261 = vector.extract_strided_slice %253 {offsets = [0, 96], sizes = [8, 32], strides = [1, 1]} : vector<8x128xf32> to vector<8x32xf32>
    %262 = arith.mulf %255, %206 : vector<8x32xf32>
    %263 = arith.mulf %254, %260 : vector<8x32xf32>
    %264 = arith.addf %262, %263 : vector<8x32xf32>
    %265 = math.tanh %264 : vector<8x32xf32>
    %266 = arith.mulf %261, %265 : vector<8x32xf32>
    %cst_85 = arith.constant dense<0.000000e+00> : vector<8x128xf32>
    %267 = tpu.matmul %266, %9, %cst_85 {dimension_numbers = #tpu.dot_dimension_numbers<[1], [0], [0], [1], [0, 0, 1, 1], [], []>} : vector<8x32xf32>, vector<32x128xf32>, vector<8x128xf32> -> vector<8x128xf32>
    %268 = vector.broadcast %10 : vector<1x128xf32> to vector<8x128xf32>
    %269 = arith.addf %267, %268 : vector<8x128xf32>
    %c5_i32 = arith.constant 5 : i32
    %c1_i32_86 = arith.constant 1 : i32
    %270 = arith.subi %c5_i32, %c1_i32_86 : i32
    %cst_87 = arith.constant dense<0.000000e+00> : vector<8x128xf32>
    %271 = tpu.matmul %232, %8, %cst_87 {dimension_numbers = #tpu.dot_dimension_numbers<[1], [0], [0], [1], [0, 0, 1, 1], [], []>} : vector<8x32xf32>, vector<32x128xf32>, vector<8x128xf32> -> vector<8x128xf32>
    %272 = arith.addf %269, %271 : vector<8x128xf32>
    %273 = arith.negf %272 : vector<8x128xf32>
    %274 = math.exp %273 : vector<8x128xf32>
    %cst_88 = arith.constant 1.000000e+00 : f32
    %275 = vector.broadcast %cst_88 : f32 to vector<8x128xf32>
    %276 = arith.addf %275, %274 : vector<8x128xf32>
    %277 = arith.divf %275, %276 : vector<8x128xf32>
    %278 = vector.extract_strided_slice %277 {offsets = [0, 0], sizes = [8, 32], strides = [1, 1]} : vector<8x128xf32> to vector<8x32xf32>
    %279 = vector.extract_strided_slice %277 {offsets = [0, 32], sizes = [8, 32], strides = [1, 1]} : vector<8x128xf32> to vector<8x32xf32>
    %280 = vector.extract_strided_slice %277 {offsets = [0, 64], sizes = [8, 32], strides = [1, 1]} : vector<8x128xf32> to vector<8x32xf32>
    %cst_89 = arith.constant 2.000000e+00 : f32
    %281 = vector.broadcast %cst_89 : f32 to vector<8x32xf32>
    %282 = arith.mulf %281, %280 : vector<8x32xf32>
    %cst_90 = arith.constant 1.000000e+00 : f32
    %283 = vector.broadcast %cst_90 : f32 to vector<8x32xf32>
    %284 = arith.subf %282, %283 : vector<8x32xf32>
    %285 = vector.extract_strided_slice %277 {offsets = [0, 96], sizes = [8, 32], strides = [1, 1]} : vector<8x128xf32> to vector<8x32xf32>
    %286 = arith.mulf %279, %230 : vector<8x32xf32>
    %287 = arith.mulf %278, %284 : vector<8x32xf32>
    %288 = arith.addf %286, %287 : vector<8x32xf32>
    %289 = math.tanh %288 : vector<8x32xf32>
    %290 = arith.mulf %285, %289 : vector<8x32xf32>
    %291 = vector.broadcast %11 : vector<1x32xf32> to vector<8x32xf32>
    %292 = arith.mulf %290, %291 : vector<8x32xf32>
    %cst_91 = arith.constant dense<0.000000e+00> : vector<8xf32>
    %293 = vector.multi_reduction <add>, %292, %cst_91 [1] : vector<8x32xf32> to vector<8xf32>
    %294 = vector.shape_cast %293 : vector<8xf32> to vector<8x1xf32>
    %295 = vector.broadcast %12 : vector<1x1xf32> to vector<8x1xf32>
    %296 = arith.addf %294, %295 : vector<8x1xf32>
    %c8_i32_92 = arith.constant 8 : i32
    %297 = arith.muli %270, %c8_i32_92 : i32
    %298 = tpu.assume_multiple %297, 8 : i32
    %299 = arith.index_cast %298 : i32 to index
    %c0_93 = arith.constant 0 : index
    %300 = vector.load %arg9[%299, %c0_93] : memref<64x1xf32, #tpu.memory_space<vmem>>, vector<8x1xf32>
    tpu.vector_store %arg9[%299, %c0_93], %296 {strides = array<i32>} : memref<64x1xf32, #tpu.memory_space<vmem>>, vector<8x1xf32>,
    %c8_i32_94 = arith.constant 8 : i32
    %301 = arith.muli %c5_i32, %c8_i32_94 : i32
    %302 = tpu.assume_multiple %301, 8 : i32
    %303 = arith.index_cast %302 : i32 to index
    %c0_95 = arith.constant 0 : index
    %304 = vector.load %arg10[%303, %c0_95] : memref<64x128xf32, #tpu.memory_space<vmem>>, vector<8x128xf32>
    %cst_96 = arith.constant dense<0.000000e+00> : vector<8x128xf32>
    %305 = tpu.matmul %266, %7, %cst_96 {dimension_numbers = #tpu.dot_dimension_numbers<[1], [0], [0], [1], [0, 0, 1, 1], [], []>} : vector<8x32xf32>, vector<32x128xf32>, vector<8x128xf32> -> vector<8x128xf32>
    %306 = arith.addf %304, %305 : vector<8x128xf32>
    %307 = arith.negf %306 : vector<8x128xf32>
    %308 = math.exp %307 : vector<8x128xf32>
    %cst_97 = arith.constant 1.000000e+00 : f32
    %309 = vector.broadcast %cst_97 : f32 to vector<8x128xf32>
    %310 = arith.addf %309, %308 : vector<8x128xf32>
    %311 = arith.divf %309, %310 : vector<8x128xf32>
    %312 = vector.extract_strided_slice %311 {offsets = [0, 0], sizes = [8, 32], strides = [1, 1]} : vector<8x128xf32> to vector<8x32xf32>
    %313 = vector.extract_strided_slice %311 {offsets = [0, 32], sizes = [8, 32], strides = [1, 1]} : vector<8x128xf32> to vector<8x32xf32>
    %314 = vector.extract_strided_slice %311 {offsets = [0, 64], sizes = [8, 32], strides = [1, 1]} : vector<8x128xf32> to vector<8x32xf32>
    %cst_98 = arith.constant 2.000000e+00 : f32
    %315 = vector.broadcast %cst_98 : f32 to vector<8x32xf32>
    %316 = arith.mulf %315, %314 : vector<8x32xf32>
    %cst_99 = arith.constant 1.000000e+00 : f32
    %317 = vector.broadcast %cst_99 : f32 to vector<8x32xf32>
    %318 = arith.subf %316, %317 : vector<8x32xf32>
    %319 = vector.extract_strided_slice %311 {offsets = [0, 96], sizes = [8, 32], strides = [1, 1]} : vector<8x128xf32> to vector<8x32xf32>
    %320 = arith.mulf %313, %264 : vector<8x32xf32>
    %321 = arith.mulf %312, %318 : vector<8x32xf32>
    %322 = arith.addf %320, %321 : vector<8x32xf32>
    %323 = math.tanh %322 : vector<8x32xf32>
    %324 = arith.mulf %319, %323 : vector<8x32xf32>
    %cst_100 = arith.constant dense<0.000000e+00> : vector<8x128xf32>
    %325 = tpu.matmul %324, %9, %cst_100 {dimension_numbers = #tpu.dot_dimension_numbers<[1], [0], [0], [1], [0, 0, 1, 1], [], []>} : vector<8x32xf32>, vector<32x128xf32>, vector<8x128xf32> -> vector<8x128xf32>
    %326 = vector.broadcast %10 : vector<1x128xf32> to vector<8x128xf32>
    %327 = arith.addf %325, %326 : vector<8x128xf32>
    %c6_i32 = arith.constant 6 : i32
    %c1_i32_101 = arith.constant 1 : i32
    %328 = arith.subi %c6_i32, %c1_i32_101 : i32
    %cst_102 = arith.constant dense<0.000000e+00> : vector<8x128xf32>
    %329 = tpu.matmul %290, %8, %cst_102 {dimension_numbers = #tpu.dot_dimension_numbers<[1], [0], [0], [1], [0, 0, 1, 1], [], []>} : vector<8x32xf32>, vector<32x128xf32>, vector<8x128xf32> -> vector<8x128xf32>
    %330 = arith.addf %327, %329 : vector<8x128xf32>
    %331 = arith.negf %330 : vector<8x128xf32>
    %332 = math.exp %331 : vector<8x128xf32>
    %cst_103 = arith.constant 1.000000e+00 : f32
    %333 = vector.broadcast %cst_103 : f32 to vector<8x128xf32>
    %334 = arith.addf %333, %332 : vector<8x128xf32>
    %335 = arith.divf %333, %334 : vector<8x128xf32>
    %336 = vector.extract_strided_slice %335 {offsets = [0, 0], sizes = [8, 32], strides = [1, 1]} : vector<8x128xf32> to vector<8x32xf32>
    %337 = vector.extract_strided_slice %335 {offsets = [0, 32], sizes = [8, 32], strides = [1, 1]} : vector<8x128xf32> to vector<8x32xf32>
    %338 = vector.extract_strided_slice %335 {offsets = [0, 64], sizes = [8, 32], strides = [1, 1]} : vector<8x128xf32> to vector<8x32xf32>
    %cst_104 = arith.constant 2.000000e+00 : f32
    %339 = vector.broadcast %cst_104 : f32 to vector<8x32xf32>
    %340 = arith.mulf %339, %338 : vector<8x32xf32>
    %cst_105 = arith.constant 1.000000e+00 : f32
    %341 = vector.broadcast %cst_105 : f32 to vector<8x32xf32>
    %342 = arith.subf %340, %341 : vector<8x32xf32>
    %343 = vector.extract_strided_slice %335 {offsets = [0, 96], sizes = [8, 32], strides = [1, 1]} : vector<8x128xf32> to vector<8x32xf32>
    %344 = arith.mulf %337, %288 : vector<8x32xf32>
    %345 = arith.mulf %336, %342 : vector<8x32xf32>
    %346 = arith.addf %344, %345 : vector<8x32xf32>
    %347 = math.tanh %346 : vector<8x32xf32>
    %348 = arith.mulf %343, %347 : vector<8x32xf32>
    %349 = vector.broadcast %11 : vector<1x32xf32> to vector<8x32xf32>
    %350 = arith.mulf %348, %349 : vector<8x32xf32>
    %cst_106 = arith.constant dense<0.000000e+00> : vector<8xf32>
    %351 = vector.multi_reduction <add>, %350, %cst_106 [1] : vector<8x32xf32> to vector<8xf32>
    %352 = vector.shape_cast %351 : vector<8xf32> to vector<8x1xf32>
    %353 = vector.broadcast %12 : vector<1x1xf32> to vector<8x1xf32>
    %354 = arith.addf %352, %353 : vector<8x1xf32>
    %c8_i32_107 = arith.constant 8 : i32
    %355 = arith.muli %328, %c8_i32_107 : i32
    %356 = tpu.assume_multiple %355, 8 : i32
    %357 = arith.index_cast %356 : i32 to index
    %c0_108 = arith.constant 0 : index
    %358 = vector.load %arg9[%357, %c0_108] : memref<64x1xf32, #tpu.memory_space<vmem>>, vector<8x1xf32>
    tpu.vector_store %arg9[%357, %c0_108], %354 {strides = array<i32>} : memref<64x1xf32, #tpu.memory_space<vmem>>, vector<8x1xf32>,
    %c8_i32_109 = arith.constant 8 : i32
    %359 = arith.muli %c6_i32, %c8_i32_109 : i32
    %360 = tpu.assume_multiple %359, 8 : i32
    %361 = arith.index_cast %360 : i32 to index
    %c0_110 = arith.constant 0 : index
    %362 = vector.load %arg10[%361, %c0_110] : memref<64x128xf32, #tpu.memory_space<vmem>>, vector<8x128xf32>
    %cst_111 = arith.constant dense<0.000000e+00> : vector<8x128xf32>
    %363 = tpu.matmul %324, %7, %cst_111 {dimension_numbers = #tpu.dot_dimension_numbers<[1], [0], [0], [1], [0, 0, 1, 1], [], []>} : vector<8x32xf32>, vector<32x128xf32>, vector<8x128xf32> -> vector<8x128xf32>
    %364 = arith.addf %362, %363 : vector<8x128xf32>
    %365 = arith.negf %364 : vector<8x128xf32>
    %366 = math.exp %365 : vector<8x128xf32>
    %cst_112 = arith.constant 1.000000e+00 : f32
    %367 = vector.broadcast %cst_112 : f32 to vector<8x128xf32>
    %368 = arith.addf %367, %366 : vector<8x128xf32>
    %369 = arith.divf %367, %368 : vector<8x128xf32>
    %370 = vector.extract_strided_slice %369 {offsets = [0, 0], sizes = [8, 32], strides = [1, 1]} : vector<8x128xf32> to vector<8x32xf32>
    %371 = vector.extract_strided_slice %369 {offsets = [0, 32], sizes = [8, 32], strides = [1, 1]} : vector<8x128xf32> to vector<8x32xf32>
    %372 = vector.extract_strided_slice %369 {offsets = [0, 64], sizes = [8, 32], strides = [1, 1]} : vector<8x128xf32> to vector<8x32xf32>
    %cst_113 = arith.constant 2.000000e+00 : f32
    %373 = vector.broadcast %cst_113 : f32 to vector<8x32xf32>
    %374 = arith.mulf %373, %372 : vector<8x32xf32>
    %cst_114 = arith.constant 1.000000e+00 : f32
    %375 = vector.broadcast %cst_114 : f32 to vector<8x32xf32>
    %376 = arith.subf %374, %375 : vector<8x32xf32>
    %377 = vector.extract_strided_slice %369 {offsets = [0, 96], sizes = [8, 32], strides = [1, 1]} : vector<8x128xf32> to vector<8x32xf32>
    %378 = arith.mulf %371, %322 : vector<8x32xf32>
    %379 = arith.mulf %370, %376 : vector<8x32xf32>
    %380 = arith.addf %378, %379 : vector<8x32xf32>
    %381 = math.tanh %380 : vector<8x32xf32>
    %382 = arith.mulf %377, %381 : vector<8x32xf32>
    %cst_115 = arith.constant dense<0.000000e+00> : vector<8x128xf32>
    %383 = tpu.matmul %382, %9, %cst_115 {dimension_numbers = #tpu.dot_dimension_numbers<[1], [0], [0], [1], [0, 0, 1, 1], [], []>} : vector<8x32xf32>, vector<32x128xf32>, vector<8x128xf32> -> vector<8x128xf32>
    %384 = vector.broadcast %10 : vector<1x128xf32> to vector<8x128xf32>
    %385 = arith.addf %383, %384 : vector<8x128xf32>
    %c7_i32 = arith.constant 7 : i32
    %c1_i32_116 = arith.constant 1 : i32
    %386 = arith.subi %c7_i32, %c1_i32_116 : i32
    %cst_117 = arith.constant dense<0.000000e+00> : vector<8x128xf32>
    %387 = tpu.matmul %348, %8, %cst_117 {dimension_numbers = #tpu.dot_dimension_numbers<[1], [0], [0], [1], [0, 0, 1, 1], [], []>} : vector<8x32xf32>, vector<32x128xf32>, vector<8x128xf32> -> vector<8x128xf32>
    %388 = arith.addf %385, %387 : vector<8x128xf32>
    %389 = arith.negf %388 : vector<8x128xf32>
    %390 = math.exp %389 : vector<8x128xf32>
    %cst_118 = arith.constant 1.000000e+00 : f32
    %391 = vector.broadcast %cst_118 : f32 to vector<8x128xf32>
    %392 = arith.addf %391, %390 : vector<8x128xf32>
    %393 = arith.divf %391, %392 : vector<8x128xf32>
    %394 = vector.extract_strided_slice %393 {offsets = [0, 0], sizes = [8, 32], strides = [1, 1]} : vector<8x128xf32> to vector<8x32xf32>
    %395 = vector.extract_strided_slice %393 {offsets = [0, 32], sizes = [8, 32], strides = [1, 1]} : vector<8x128xf32> to vector<8x32xf32>
    %396 = vector.extract_strided_slice %393 {offsets = [0, 64], sizes = [8, 32], strides = [1, 1]} : vector<8x128xf32> to vector<8x32xf32>
    %cst_119 = arith.constant 2.000000e+00 : f32
    %397 = vector.broadcast %cst_119 : f32 to vector<8x32xf32>
    %398 = arith.mulf %397, %396 : vector<8x32xf32>
    %cst_120 = arith.constant 1.000000e+00 : f32
    %399 = vector.broadcast %cst_120 : f32 to vector<8x32xf32>
    %400 = arith.subf %398, %399 : vector<8x32xf32>
    %401 = vector.extract_strided_slice %393 {offsets = [0, 96], sizes = [8, 32], strides = [1, 1]} : vector<8x128xf32> to vector<8x32xf32>
    %402 = arith.mulf %395, %346 : vector<8x32xf32>
    %403 = arith.mulf %394, %400 : vector<8x32xf32>
    %404 = arith.addf %402, %403 : vector<8x32xf32>
    %405 = math.tanh %404 : vector<8x32xf32>
    %406 = arith.mulf %401, %405 : vector<8x32xf32>
    %407 = vector.broadcast %11 : vector<1x32xf32> to vector<8x32xf32>
    %408 = arith.mulf %406, %407 : vector<8x32xf32>
    %cst_121 = arith.constant dense<0.000000e+00> : vector<8xf32>
    %409 = vector.multi_reduction <add>, %408, %cst_121 [1] : vector<8x32xf32> to vector<8xf32>
    %410 = vector.shape_cast %409 : vector<8xf32> to vector<8x1xf32>
    %411 = vector.broadcast %12 : vector<1x1xf32> to vector<8x1xf32>
    %412 = arith.addf %410, %411 : vector<8x1xf32>
    %c8_i32_122 = arith.constant 8 : i32
    %413 = arith.muli %386, %c8_i32_122 : i32
    %414 = tpu.assume_multiple %413, 8 : i32
    %415 = arith.index_cast %414 : i32 to index
    %c0_123 = arith.constant 0 : index
    %416 = vector.load %arg9[%415, %c0_123] : memref<64x1xf32, #tpu.memory_space<vmem>>, vector<8x1xf32>
    tpu.vector_store %arg9[%415, %c0_123], %412 {strides = array<i32>} : memref<64x1xf32, #tpu.memory_space<vmem>>, vector<8x1xf32>,
    %c8_i32_124 = arith.constant 8 : i32
    %417 = arith.muli %c7_i32, %c8_i32_124 : i32
    %418 = tpu.assume_multiple %417, 8 : i32
    %419 = arith.index_cast %418 : i32 to index
    %c0_125 = arith.constant 0 : index
    %420 = vector.load %arg10[%419, %c0_125] : memref<64x128xf32, #tpu.memory_space<vmem>>, vector<8x128xf32>
    %cst_126 = arith.constant dense<0.000000e+00> : vector<8x128xf32>
    %421 = tpu.matmul %382, %7, %cst_126 {dimension_numbers = #tpu.dot_dimension_numbers<[1], [0], [0], [1], [0, 0, 1, 1], [], []>} : vector<8x32xf32>, vector<32x128xf32>, vector<8x128xf32> -> vector<8x128xf32>
    %422 = arith.addf %420, %421 : vector<8x128xf32>
    %423 = arith.negf %422 : vector<8x128xf32>
    %424 = math.exp %423 : vector<8x128xf32>
    %cst_127 = arith.constant 1.000000e+00 : f32
    %425 = vector.broadcast %cst_127 : f32 to vector<8x128xf32>
    %426 = arith.addf %425, %424 : vector<8x128xf32>
    %427 = arith.divf %425, %426 : vector<8x128xf32>
    %428 = vector.extract_strided_slice %427 {offsets = [0, 0], sizes = [8, 32], strides = [1, 1]} : vector<8x128xf32> to vector<8x32xf32>
    %429 = vector.extract_strided_slice %427 {offsets = [0, 32], sizes = [8, 32], strides = [1, 1]} : vector<8x128xf32> to vector<8x32xf32>
    %430 = vector.extract_strided_slice %427 {offsets = [0, 64], sizes = [8, 32], strides = [1, 1]} : vector<8x128xf32> to vector<8x32xf32>
    %cst_128 = arith.constant 2.000000e+00 : f32
    %431 = vector.broadcast %cst_128 : f32 to vector<8x32xf32>
    %432 = arith.mulf %431, %430 : vector<8x32xf32>
    %cst_129 = arith.constant 1.000000e+00 : f32
    %433 = vector.broadcast %cst_129 : f32 to vector<8x32xf32>
    %434 = arith.subf %432, %433 : vector<8x32xf32>
    %435 = vector.extract_strided_slice %427 {offsets = [0, 96], sizes = [8, 32], strides = [1, 1]} : vector<8x128xf32> to vector<8x32xf32>
    %436 = arith.mulf %429, %380 : vector<8x32xf32>
    %437 = arith.mulf %428, %434 : vector<8x32xf32>
    %438 = arith.addf %436, %437 : vector<8x32xf32>
    %439 = math.tanh %438 : vector<8x32xf32>
    %440 = arith.mulf %435, %439 : vector<8x32xf32>
    %cst_130 = arith.constant dense<0.000000e+00> : vector<8x128xf32>
    %441 = tpu.matmul %440, %9, %cst_130 {dimension_numbers = #tpu.dot_dimension_numbers<[1], [0], [0], [1], [0, 0, 1, 1], [], []>} : vector<8x32xf32>, vector<32x128xf32>, vector<8x128xf32> -> vector<8x128xf32>
    %442 = vector.broadcast %10 : vector<1x128xf32> to vector<8x128xf32>
    %443 = arith.addf %441, %442 : vector<8x128xf32>
    %c7_i32_131 = arith.constant 7 : i32
    %cst_132 = arith.constant dense<0.000000e+00> : vector<8x128xf32>
    %444 = tpu.matmul %406, %8, %cst_132 {dimension_numbers = #tpu.dot_dimension_numbers<[1], [0], [0], [1], [0, 0, 1, 1], [], []>} : vector<8x32xf32>, vector<32x128xf32>, vector<8x128xf32> -> vector<8x128xf32>
    %445 = arith.addf %443, %444 : vector<8x128xf32>
    %446 = arith.negf %445 : vector<8x128xf32>
    %447 = math.exp %446 : vector<8x128xf32>
    %cst_133 = arith.constant 1.000000e+00 : f32
    %448 = vector.broadcast %cst_133 : f32 to vector<8x128xf32>
    %449 = arith.addf %448, %447 : vector<8x128xf32>
    %450 = arith.divf %448, %449 : vector<8x128xf32>
    %451 = vector.extract_strided_slice %450 {offsets = [0, 0], sizes = [8, 32], strides = [1, 1]} : vector<8x128xf32> to vector<8x32xf32>
    %452 = vector.extract_strided_slice %450 {offsets = [0, 32], sizes = [8, 32], strides = [1, 1]} : vector<8x128xf32> to vector<8x32xf32>
    %453 = vector.extract_strided_slice %450 {offsets = [0, 64], sizes = [8, 32], strides = [1, 1]} : vector<8x128xf32> to vector<8x32xf32>
    %cst_134 = arith.constant 2.000000e+00 : f32
    %454 = vector.broadcast %cst_134 : f32 to vector<8x32xf32>
    %455 = arith.mulf %454, %453 : vector<8x32xf32>
    %cst_135 = arith.constant 1.000000e+00 : f32
    %456 = vector.broadcast %cst_135 : f32 to vector<8x32xf32>
    %457 = arith.subf %455, %456 : vector<8x32xf32>
    %458 = vector.extract_strided_slice %450 {offsets = [0, 96], sizes = [8, 32], strides = [1, 1]} : vector<8x128xf32> to vector<8x32xf32>
    %459 = arith.mulf %452, %404 : vector<8x32xf32>
    %460 = arith.mulf %451, %457 : vector<8x32xf32>
    %461 = arith.addf %459, %460 : vector<8x32xf32>
    %462 = math.tanh %461 : vector<8x32xf32>
    %463 = arith.mulf %458, %462 : vector<8x32xf32>
    %464 = vector.broadcast %11 : vector<1x32xf32> to vector<8x32xf32>
    %465 = arith.mulf %463, %464 : vector<8x32xf32>
    %cst_136 = arith.constant dense<0.000000e+00> : vector<8xf32>
    %466 = vector.multi_reduction <add>, %465, %cst_136 [1] : vector<8x32xf32> to vector<8xf32>
    %467 = vector.shape_cast %466 : vector<8xf32> to vector<8x1xf32>
    %468 = vector.broadcast %12 : vector<1x1xf32> to vector<8x1xf32>
    %469 = arith.addf %467, %468 : vector<8x1xf32>
    %c56 = arith.constant 56 : index
    %c0_137 = arith.constant 0 : index
    %470 = vector.load %arg9[%c56, %c0_137] : memref<64x1xf32, #tpu.memory_space<vmem>>, vector<8x1xf32>
    tpu.vector_store %arg9[%c56, %c0_137], %469 {strides = array<i32>} : memref<64x1xf32, #tpu.memory_space<vmem>>, vector<8x1xf32>,
    return
  }
}

</mosaic_0001>

<bundles_post_ra>
// kernel: lstm_reg_forward.1
= control target key start
LH: loop header
LB: loop body
LE: loop exit
PB: predicated region body
PF: predicated region fallthrough
CT: control target
= control target key end

     0   :  { %s3856_s0 = inlined_call_operand.vmem [shape: f32[64,16], index: 0, kind: input, shape index: {}]   ;;  %s3857_s1 = inlined_call_operand.hbm [shape: f32[16,128], index: 1, kind: input, shape index: {}]   ;;  %s3858_s2 = inlined_call_operand.vmem [shape: f32[32,128], index: 2, kind: input, shape index: {}]   ;;  %s3859_s3 = inlined_call_operand.vmem [shape: f32[1,128], index: 3, kind: input, shape index: {}]   ;;  %s3860_s4 = inlined_call_operand.vmem [shape: f32[32,128], index: 4, kind: input, shape index: {}]   ;;  %s3861_s5 = inlined_call_operand.vmem [shape: f32[32,128], index: 5, kind: input, shape index: {}]   ;;  %s3862_s6 = inlined_call_operand.vmem [shape: f32[1,128], index: 6, kind: input, shape index: {}]   ;;  %s3863_s7 = inlined_call_operand.vmem [shape: f32[1,32], index: 7, kind: input, shape index: {}]   ;;  %s3864_s8 = inlined_call_operand.<no memory space> [shape: f32[1,1], index: 8, kind: input, shape index: {}]   ;;  %s3865_s9 = inlined_call_operand.vmem [shape: f32[64,1], index: 9, kind: output, shape index: {}]  }
   0x1   :  { %v14_v0 = vstv %s3864_s8 }
   0x2   :  { %15 = vst [vmem:[#allocation3] sm:$0x1] %v14_v0 }
   0x3   :  { %16 = vsyncpa [#allocation5], 0  ;;  %s3305_s11 = smov [#allocation4]   ;;  %s3281_s15 = scalar_lea.hbm %s3857_s1, 256 }
   0x4   :  { %s24_s12 = sshll.u32 %s3305_s11, 4  ;;  %p3282_p0 = scmp.ne.s32.totalorder %s3857_s1, %s3281_s15  ;;  %s25_s12 = int_to_ptr.vmem [resolvable:$true] %s24_s12 }
   0x5   :  { %p3285_p1 = scmp.lt.u32.totalorder %s3281_s15, %s3857_s1 }
   0x7   :  { %p3287_p2 = pnand %p3285_p1, %p3282_p0 }
   0x9   :  { %3290 = shalt.err (!%p3287_p2)
}
   0xa   :  { %s3291_s8 = scalar_lea.vmem %s25_s12, 256  ;;  %p3296_p4 = scmp.lt.s32.totalorder %s25_s12, %s25_s12 }
   0xb   :  { %p3292_p3 = scmp.ne.s32.totalorder %s25_s12, %s3291_s8  ;;  %p3297_p5 = scmp.lt.s32.totalorder %s3291_s8, %s3291_s8 }
   0xd   :  { %p3298_p6 = por %p3297_p5, %p3296_p4 }
   0xf   :  { %p3299_p7 = pnand %p3298_p6, %p3292_p3 }
  0x11   :  { %3302 = shalt.err (!%p3299_p7)
}
  0x12   :  { %s3306_s20 = smov 128   ;;  %s3307_s21 = smov 8  }
  0x13   :  { %30 = dma.hbm_to_vmem [thread:$0]  %s3857_s1, 256, %s25_s12, [#allocation5], %s3306_s20, %s3306_s20, %s3307_s21  }
  0x14   :  { %3303 = dma.done.wait [#allocation5], 256  }
  0x15   :  { %3304 = vsyncadd [#allocation5], 4294967040  ;;  %vm65_vm0 = vcmask 130048   ;;  %v56_v1 = vld [vmem:[#allocation4] sm:$0xff]  ;;  %v57_v2 = vld [vmem:[#allocation4 + $0x8] sm:$0xff]  ;;  %v3308_v11 = vmov 0.0|0.0  }
  0x16   :  { %v52_v3 = vld [vmem:[%s3856_s0 + $0x20] sm:$0xff]  ;;  %v3002_v4 = vpack.c.bf16 %v57_v2, %v56_v1  ;;  %v204_v6 = vld [vmem:[%s3858_s2 + $0x8] sm:$0xff]  ;;  %v54_v12 = vld [vmem:[%s3856_s0 + $0x30] sm:$0xff]  ;;  %vm3309_vm1 = vmmov 0   ;;  %v3310_v17 = vmov 0.0   ;;  %s3311_s22 = smov 64  }
  0x17   :  { %2732 = vmatprep.mubr.msk.f32.mxu1 %vm65_vm0, %v52_v3  ;;  %v203_v5 = vld [vmem:[%s3858_s2] sm:$0xff]  ;;  %v53_v8 = vld [vmem:[%s3856_s0 + $0x28] sm:$0xff]  ;;  %v205_v13 = vld [vmem:[%s3858_s2 + $0x10] sm:$0xff]  ;;  %vm219_vm2 = vcmask 261120   ;;  %s3313_s20 = smov 96   ;;  %vm519_vm3 = vcmask 7168  }
  0x18   :  { %v48_v7 = vld [vmem:[%s3856_s0] sm:$0xff]  ;;  %3150 = vmatprep.subr.bf16.mxu1 %v3002_v4  ;;  %3003 = vmatprep.subr.bf16.mxu0 %v3002_v4  ;;  %v3395_v9 = vpack.c.bf16 %v204_v6, %v203_v5  ;;  %v49_v10 = vld [vmem:[%s3856_s0 + $0x8] sm:$0xff]  ;;  %v206_v14 = vld [vmem:[%s3858_s2 + $0x18] sm:$0xff] }
  0x19   :  { %3151 = vmatpush3.bf16.msra.mxu1 %v3002_v4  ;;  %3005 = vmatpush3.bf16.msra.mxu0 %v3002_v4  ;;  %v55_v15 = vld [vmem:[%s3856_s0 + $0x38] sm:$0xff]  ;;  %v3419_v16 = vpack.c.bf16 %v206_v14, %v205_v13  ;;  %v3443_v22 = vld [vmem:[%s3859_s3] ss:$0 sm:$0xff]  ;;  %s3312_s3 = smov 32   ;;  %v212_v41 = vld [vmem:[%s3860_s4 + $0x8] sm:$0xff] }
  0x1a   :  { %3006 = vmatprep.subr.bf16.mxu1 %v3308_v11  ;;  %2726 = vmatprep.mubr.msk.f32.mxu0 %vm65_vm0, %v48_v7  ;;  %v211_v40 = vld [vmem:[%s3860_s4] sm:$0xff]  ;;  %v50_v42 = vld [vmem:[%s3856_s0 + $0x10] sm:$0xff]  ;;  %v51_v44 = vld [vmem:[%s3856_s0 + $0x18] sm:$0xff] }
  0x1b   :  { %3024 = vmatprep.subr.bf16.mxu0 %v3308_v11  ;;  %v3464_v43 = vpack.c.bf16 %v212_v41, %v211_v40  ;;  %v213_v45 = vld [vmem:[%s3860_s4 + $0x10] sm:$0xff]  ;;  %v214_v46 = vld [vmem:[%s3860_s4 + $0x18] sm:$0xff]  ;;  %v207_v53 = vld [vmem:[%s3861_s5] sm:$0xff] }
  0x1c   :  { %2733 = vmatmul.mubr.msk.f32.vlgmr.msra.gmra.mrb[0].mxu1 %vm65_vm0, %v53_v8  ;;  %2727 = vmatmul.mubr.msk.f32.vlgmr.msra.gmra.mrb[0].mxu0 %vm65_vm0, %v49_v10  ;;  %v3478_v47 = vpack.c.bf16 %v214_v46, %v213_v45  ;;  %v208_v54 = vld [vmem:[%s3861_s5 + $0x8] sm:$0xff]  ;;  %v209_v56 = vld [vmem:[%s3861_s5 + $0x10] sm:$0xff]  ;;  %v210_v57 = vld [vmem:[%s3861_s5 + $0x18] sm:$0xff] }
  0x1d   :  { %3008 = vmatpush3.bf16.msra.mxu1 %v3395_v9  ;;  %2735 = vmatprep.mubr.msk.f32.mxu1 %vm65_vm0, %v54_v12  ;;  %v3497_v55 = vpack.c.bf16 %v208_v54, %v207_v53  ;;  %v3508_v59 = vpack.c.bf16 %v210_v57, %v209_v56  ;;  %v3533_v1 = vld [vmem:[%s3862_s6] ss:$0 sm:$0xff] }
  0x1e   :  { %3009 = vmatprep.subr.bf16.mxu1 %v3308_v11  ;;  %3026 = vmatpush3.bf16.msra.mxu0 %v3395_v9 }
  0x1f   :  { %3027 = vmatprep.subr.bf16.mxu0 %v3308_v11  ;;  %2729 = vmatprep.mubr.msk.f32.mxu0 %vm65_vm0, %v50_v42 }
  0x20   :  { %2736 = vmatmul.mubr.msk.f32.gmra.mrb[2].mxu1 %vm65_vm0, %v55_v15  ;;  %2730 = vmatmul.mubr.msk.f32.gmra.mrb[2].mxu0 %vm65_vm0, %v51_v44 }
  0x21   :  { %3011 = vmatpush3.bf16.msra.mxu1 %v3419_v16  ;;  %2746 = vmatprep.mubr.msk.f32.mxu1 %vm3309_vm1, %v3310_v17 }
  0x22   :  { %3012 = vmatprep.subr.bf16.mxu1 %v3308_v11  ;;  %3029 = vmatpush3.bf16.msra.mxu0 %v3419_v16 }
  0x23   :  { %3030 = vmatprep.subr.bf16.mxu0 %v3308_v11  ;;  %2779 = vmatprep.mubr.msk.f32.mxu0 %vm3309_vm1, %v3310_v17 }
  0x24   :  { %2747 = vmatmul.mubr.f32.vlgmr.msra.gmra.mrb[4].mxu1 %v3310_v17 }
  0x25   :  { %2757 = vmatprep.mubr.msk.f32.mxu1 %vm3309_vm1, %v3310_v17  ;;  %3014 = vmatpush3.bf16.msra.mxu1 %v3464_v43 }
  0x26   :  { %3015 = vmatprep.subr.bf16.mxu1 %v3308_v11 }
  0x29   :  { %3017 = vmatpush3.bf16.msra.mxu1 %v3478_v47 }
  0x2a   :  { %3018 = vmatprep.subr.bf16.mxu1 %v3308_v11 }
  0xef   :  { %v3434_v18 = vpop.f32.mrb[0].mxu1  ;;  %v3436_v19 = vpop.f32.mrb[0].mxu0 }
  0xf0   :  { %v3438_v20 = vpop.f32.mrb[1].mxu1  ;;  %v156_v21 = vpop.f32.mrb[1].mxu0  ;;  %v162_v60 = vadd.f32 %v3436_v19, %v3443_v22 }
  0xf1   :  { %v157_v25 = vadd.f32 %v3443_v22, %v156_v21 }
  0xf3   :  { %v3445_v23 = vpop.f32.mrb[2].mxu1  ;;  %v3487_v51 = vpop.f32.mrb[2].mxu0 }
  0xf4   :  { %v3447_v24 = vpop.f32.mrb[3].mxu1  ;;  %v3489_v52 = vpop.f32.mrb[3].mxu0 }
  0xf5   :  { %v167_v44 = vadd.f32 %v3443_v22, %v3489_v52 }
  0xf7   :  { %v289_v26 = vpop.f32.mrb[4].mxu1 }
  0xf8   :  { %v293_v27 = vadd.f32 %v289_v26, %v157_v25  ;;  %v2748_v28 = vpop.f32.mrb[5].mxu1 }
  0xfa   :  { %v2529_v29 = vmul.f32 -1.442695, %v293_v27 }
  0xfc   :  { %3185 = vpow2.f32 %v2529_v29 }
 0x106   :  { %v3186_v30 = vpop.eup %3185 }
 0x107   :  { %v297_v31 = vadd.f32 1.0, %v3186_v30 }
 0x109   :  { %3187 = vrcp.f32 %v297_v31 }
 0x113   :  { %v3188_v32 = vpop.eup %3187 }
 0x114   :  { %v300_v33 = vmul.f32 2.0, %v3188_v32  ;;  %v302_v37 = vmul.f32 0.0, %v3188_v32 }
 0x116   :  { %v2530_v34 = vadd.f32 -1.0, %v300_v33 }
 0x118   :  { %304 = vrot.lane.b32.xlu0 %v2530_v34, %s3311_s22 }
 0x18a   :  { %v305_v35 = vpop.permute.xlu0 %304 }
 0x18b   :  { %v307_v36 = vmul.f32 %v3188_v32, %v305_v35 }
 0x18d   :  { %309 = vrot.lane.b32.xlu0 %v307_v36, %s3312_s3 }
 0x1ff   :  { %v310_v38 = vpop.permute.xlu0 %309 }
 0x200   :  { %v3452_v39 = vadd.f32 %v310_v38, %v302_v37 }
 0x202   :  { %3189 = vtanh.f32 %v3452_v39 }
 0x20c   :  { %v3190_v48 = vpop.eup %3189 }
 0x20d   :  { %315 = vrot.lane.b32.xlu1 %v3190_v48, %s3311_s22 }
 0x27f   :  { %v316_v49 = vpop.permute.xlu1 %315 }
 0x280   :  { %v318_v50 = vmul.f32 %v3188_v32, %v316_v49 }
 0x282   :  { %326 = vrot.lane.b32.xlu1 %v318_v50, %s3312_s3 }
 0x2f4   :  { %v327_v58 = vpop.permute.xlu1 %326 }
 0x2f5   :  { %2758 = vmatmul.mubr.msk.f32.vlgmr.msra.gmra.mrb[6].mxu1 %vm219_vm2, %v327_v58  ;;  %2780 = vmatmul.mubr.msk.f32.vlgmr.msra.gmra.mrb[4].mxu0 %vm219_vm2, %v327_v58 }
 0x2f6   :  { %3020 = vmatpush3.bf16.msra.mxu1 %v3497_v55  ;;  %2768 = vmatprep.mubr.msk.f32.mxu1 %vm3309_vm1, %v3310_v17 }
 0x2f7   :  { %3021 = vmatprep.subr.bf16.mxu1 %v3308_v11  ;;  %3032 = vmatpush3.bf16.msra.mxu0 %v3464_v43 }
 0x2f8   :  { %3033 = vmatprep.subr.bf16.mxu0 %v3308_v11  ;;  %2790 = vmatprep.mubr.msk.f32.mxu0 %vm3309_vm1, %v3310_v17 }
 0x2fa   :  { %3023 = vmatpush3.bf16.msra.mxu1 %v3508_v59 }
 0x2fb   :  { %3042 = vmatprep.subr.bf16.mxu1 %v3308_v11  ;;  %3035 = vmatpush3.bf16.msra.mxu0 %v3478_v47 }
 0x2fc   :  { %3036 = vmatprep.subr.bf16.mxu0 %v3308_v11 }
 0x2fd   :  { %2769 = vmatmul.mubr.f32.vlgmr.msra.gmra.mrb[6].mxu1 %v3310_v17 }
 0x2fe   :  { %3044 = vmatpush3.bf16.msra.mxu1 %v3395_v9  ;;  %2812 = vmatprep.mubr.msk.f32.mxu1 %vm3309_vm1, %v3310_v17 }
 0x2ff   :  { %3045 = vmatprep.subr.bf16.mxu1 %v3308_v11 }
 0x302   :  { %3047 = vmatpush3.bf16.msra.mxu1 %v3419_v16 }
 0x303   :  { %3048 = vmatprep.subr.bf16.mxu1 %v3308_v11 }
 0x3c8   :  { %v589_v61 = vpop.f32.mrb[4].mxu0 }
 0x3c9   :  { %v593_v62 = vadd.f32 %v589_v61, %v162_v60  ;;  %v2781_v63 = vpop.f32.mrb[5].mxu0 }
 0x3cb   :  { %v2538_v0 = vmul.f32 -1.442695, %v593_v62 }
 0x3cd   :  { %3191 = vpow2.f32 %v2538_v0 }
 0x3d0   :  { %v466_v2 = vpop.f32.mrb[6].mxu1 }
 0x3d1   :  { %v3152_v3 = vadd.f32 %v3533_v1, %v466_v2  ;;  %v2770_v4 = vpop.f32.mrb[7].mxu1 }
 0x3d3   :  { %v2533_v5 = vmul.f32 -1.442695, %v3152_v3 }
 0x3d5   :  { %3193 = vpow2.f32 %v2533_v5 }
 0x3d7   :  { %v3192_v6 = vpop.eup %3191 }
 0x3d8   :  { %v597_v7 = vadd.f32 1.0, %v3192_v6 }
 0x3da   :  { %3195 = vrcp.f32 %v597_v7 }
 0x3df   :  { %v3194_v8 = vpop.eup %3193 }
 0x3e0   :  { %v474_v10 = vadd.f32 1.0, %v3194_v8 }
 0x3e2   :  { %3197 = vrcp.f32 %v474_v10 }
 0x3e4   :  { %v3196_v12 = vpop.eup %3195 }
 0x3e5   :  { %v600_v13 = vmul.f32 2.0, %v3196_v12  ;;  %v602_v29 = vmul.f32 %v3196_v12, %v3452_v39 }
 0x3e7   :  { %v2539_v14 = vadd.f32 -1.0, %v600_v13 }
 0x3e9   :  { %604 = vrot.lane.b32.xlu0 %v2539_v14, %s3311_s22 }
 0x3ec   :  { %v3198_v15 = vpop.eup %3197 }
 0x3ed   :  { %v477_v19 = vmul.f32 2.0, %v3198_v15  ;;  %v479_v32 = vmul.f32 0.0, %v3198_v15 }
 0x3ef   :  { %v2534_v21 = vadd.f32 -1.0, %v477_v19 }
 0x3f1   :  { %481 = vrot.lane.b32.xlu1 %v2534_v21, %s3311_s22 }
 0x45b   :  { %v605_v25 = vpop.permute.xlu0 %604 }
 0x45c   :  { %v607_v26 = vmul.f32 %v3196_v12, %v605_v25 }
 0x45e   :  { %609 = vrot.lane.b32.xlu0 %v607_v26, %s3312_s3 }
 0x463   :  { %v482_v27 = vpop.permute.xlu1 %481 }
 0x464   :  { %v484_v28 = vmul.f32 %v3198_v15, %v482_v27 }
 0x466   :  { %486 = vrot.lane.b32.xlu1 %v484_v28, %s3312_s3 }
 0x4d0   :  { %v610_v30 = vpop.permute.xlu0 %609 }
 0x4d1   :  { %v3541_v31 = vadd.f32 %v610_v30, %v602_v29 }
 0x4d3   :  { %3199 = vtanh.f32 %v3541_v31 }
 0x4d8   :  { %v487_v33 = vpop.permute.xlu1 %486 }
 0x4d9   :  { %v3544_v34 = vadd.f32 %v487_v33, %v479_v32 }
 0x4db   :  { %3201 = vtanh.f32 %v3544_v34 }
 0x4dd   :  { %v3200_v35 = vpop.eup %3199 }
 0x4de   :  { %615 = vrot.lane.b32.xlu0 %v3200_v35, %s3311_s22 }
 0x4e5   :  { %v3202_v36 = vpop.eup %3201 }
 0x4e6   :  { %492 = vrot.lane.b32.xlu1 %v3202_v36, %s3311_s22 }
 0x550   :  { %v616_v37 = vpop.permute.xlu0 %615 }
 0x551   :  { %v618_v38 = vmul.f32 %v3196_v12, %v616_v37 }
 0x553   :  { %620 = vrot.lane.b32.xlu0 %v618_v38, %s3312_s3 }
 0x558   :  { %v493_v39 = vpop.permute.xlu1 %492 }
 0x559   :  { %v3550_v40 = vmul.f32 %v3198_v15, %v493_v39 }
 0x55b   :  { %695 = vrot.lane.b32.xlu1 %v3550_v40, %s3312_s3 }
 0x5c5   :  { %v621_v41 = vpop.permute.xlu0 %620 }
 0x5c6   :  { %2791 = vmatmul.mubr.msk.f32.vlgmr.msra.gmra.mrb[6].mxu0 %vm219_vm2, %v621_v41  ;;  %2813 = vmatmul.mubr.msk.f32.vlgmr.msra.gmra.mrb[8].mxu1 %vm219_vm2, %v621_v41 }
 0x5c7   :  { %3038 = vmatpush3.bf16.msra.mxu0 %v3497_v55  ;;  %2801 = vmatprep.mubr.msk.f32.mxu0 %vm3309_vm1, %v3310_v17 }
 0x5c8   :  { %3039 = vmatprep.subr.bf16.mxu0 %v3308_v11  ;;  %3050 = vmatpush3.bf16.msra.mxu1 %v3464_v43 }
 0x5c9   :  { %3051 = vmatprep.subr.bf16.mxu1 %v3308_v11  ;;  %2823 = vmatprep.mubr.msk.f32.mxu1 %vm3309_vm1, %v3310_v17 }
 0x5cb   :  { %3041 = vmatpush3.bf16.msra.mxu0 %v3508_v59 }
 0x5cc   :  { %3060 = vmatprep.subr.bf16.mxu0 %v3308_v11  ;;  %3053 = vmatpush3.bf16.msra.mxu1 %v3478_v47 }
 0x5cd   :  { %v696_v42 = vpop.permute.xlu1 %695  ;;  %3054 = vmatprep.subr.bf16.mxu1 %v3308_v11 }
 0x5ce   :  { %2802 = vmatmul.mubr.msk.f32.vlgmr.msra.gmra.mrb[6].mxu0 %vm219_vm2, %v696_v42 }
 0x5cf   :  { %3062 = vmatpush3.bf16.msra.mxu0 %v3395_v9  ;;  %2845 = vmatprep.mubr.msk.f32.mxu0 %vm3309_vm1, %v3310_v17 }
 0x5d0   :  { %3063 = vmatprep.subr.bf16.mxu0 %v3308_v11 }
 0x5d3   :  { %3065 = vmatpush3.bf16.msra.mxu0 %v3419_v16 }
 0x5d4   :  { %3066 = vmatprep.subr.bf16.mxu0 %v3308_v11 }
 0x699   :  { %v874_v45 = vpop.f32.mrb[8].mxu1 }
 0x69a   :  { %v878_v46 = vadd.f32 %v874_v45, %v167_v44  ;;  %v2814_v48 = vpop.f32.mrb[9].mxu1 }
 0x69c   :  { %v2546_v49 = vmul.f32 -1.442695, %v878_v46 }
 0x69e   :  { %3203 = vpow2.f32 %v2546_v49 }
 0x6a1   :  { %v765_v50 = vpop.f32.mrb[6].mxu0 }
 0x6a2   :  { %v3153_v53 = vadd.f32 %v3533_v1, %v765_v50  ;;  %v2803_v54 = vpop.f32.mrb[7].mxu0 }
 0x6a4   :  { %v2542_v56 = vmul.f32 -1.442695, %v3153_v53 }
 0x6a6   :  { %3205 = vpow2.f32 %v2542_v56 }
 0x6a8   :  { %v3204_v57 = vpop.eup %3203 }
 0x6a9   :  { %v882_v58 = vadd.f32 1.0, %v3204_v57 }
 0x6ab   :  { %3207 = vrcp.f32 %v882_v58 }
 0x6b0   :  { %v3206_v60 = vpop.eup %3205 }
 0x6b1   :  { %v773_v61 = vadd.f32 1.0, %v3206_v60 }
 0x6b3   :  { %3209 = vrcp.f32 %v773_v61 }
 0x6b5   :  { %v3208_v62 = vpop.eup %3207 }
 0x6b6   :  { %v885_v63 = vmul.f32 2.0, %v3208_v62  ;;  %v887_v8 = vmul.f32 %v3208_v62, %v3541_v31  ;;  %v172_v31 = vadd.f32 %v3487_v51, %v3443_v22 }
 0x6b8   :  { %v2547_v52 = vadd.f32 -1.0, %v885_v63 }
 0x6ba   :  { %889 = vrot.lane.b32.xlu0 %v2547_v52, %s3311_s22 }
 0x6bd   :  { %v3210_v0 = vpop.eup %3209 }
 0x6be   :  { %v776_v2 = vmul.f32 2.0, %v3210_v0  ;;  %v778_v13 = vmul.f32 %v3210_v0, %v3544_v34 }
 0x6c0   :  { %v2543_v3 = vadd.f32 -1.0, %v776_v2 }
 0x6c2   :  { %780 = vrot.lane.b32.xlu1 %v2543_v3, %s3311_s22 }
 0x72c   :  { %v890_v4 = vpop.permute.xlu0 %889 }
 0x72d   :  { %v892_v5 = vmul.f32 %v3208_v62, %v890_v4 }
 0x72f   :  { %894 = vrot.lane.b32.xlu0 %v892_v5, %s3312_s3 }
 0x734   :  { %v781_v6 = vpop.permute.xlu1 %780 }
 0x735   :  { %v783_v7 = vmul.f32 %v3210_v0, %v781_v6 }
 0x737   :  { %785 = vrot.lane.b32.xlu1 %v783_v7, %s3312_s3 }
 0x7a1   :  { %v895_v10 = vpop.permute.xlu0 %894 }
 0x7a2   :  { %v3583_v12 = vadd.f32 %v895_v10, %v887_v8 }
 0x7a4   :  { %3211 = vtanh.f32 %v3583_v12 }
 0x7a9   :  { %v786_v14 = vpop.permute.xlu1 %785 }
 0x7aa   :  { %v3587_v15 = vadd.f32 %v786_v14, %v778_v13 }
 0x7ac   :  { %3213 = vtanh.f32 %v3587_v15 }
 0x7ae   :  { %v3212_v19 = vpop.eup %3211 }
 0x7af   :  { %900 = vrot.lane.b32.xlu0 %v3212_v19, %s3311_s22 }
 0x7b6   :  { %v3214_v21 = vpop.eup %3213 }
 0x7b7   :  { %791 = vrot.lane.b32.xlu1 %v3214_v21, %s3311_s22 }
 0x821   :  { %v901_v25 = vpop.permute.xlu0 %900 }
 0x822   :  { %v903_v26 = vmul.f32 %v3208_v62, %v901_v25 }
 0x824   :  { %905 = vrot.lane.b32.xlu0 %v903_v26, %s3312_s3 }
 0x829   :  { %v792_v27 = vpop.permute.xlu1 %791 }
 0x82a   :  { %v3593_v28 = vmul.f32 %v3210_v0, %v792_v27 }
 0x82c   :  { %980 = vrot.lane.b32.xlu1 %v3593_v28, %s3312_s3 }
 0x896   :  { %v906_v29 = vpop.permute.xlu0 %905 }
 0x897   :  { %2824 = vmatmul.mubr.msk.f32.vlgmr.msra.gmra.mrb[10].mxu1 %vm219_vm2, %v906_v29  ;;  %2846 = vmatmul.mubr.msk.f32.vlgmr.msra.gmra.mrb[8].mxu0 %vm219_vm2, %v906_v29 }
 0x898   :  { %3056 = vmatpush3.bf16.msra.mxu1 %v3497_v55  ;;  %2834 = vmatprep.mubr.msk.f32.mxu1 %vm3309_vm1, %v3310_v17 }
 0x899   :  { %3057 = vmatprep.subr.bf16.mxu1 %v3308_v11  ;;  %3068 = vmatpush3.bf16.msra.mxu0 %v3464_v43 }
 0x89a   :  { %3069 = vmatprep.subr.bf16.mxu0 %v3308_v11  ;;  %2856 = vmatprep.mubr.msk.f32.mxu0 %vm3309_vm1, %v3310_v17 }
 0x89c   :  { %3059 = vmatpush3.bf16.msra.mxu1 %v3508_v59 }
 0x89d   :  { %3078 = vmatprep.subr.bf16.mxu1 %v3308_v11  ;;  %3071 = vmatpush3.bf16.msra.mxu0 %v3478_v47 }
 0x89e   :  { %v981_v30 = vpop.permute.xlu1 %980  ;;  %3072 = vmatprep.subr.bf16.mxu0 %v3308_v11 }
 0x89f   :  { %2835 = vmatmul.mubr.msk.f32.vlgmr.msra.gmra.mrb[10].mxu1 %vm219_vm2, %v981_v30 }
 0x8a0   :  { %3080 = vmatpush3.bf16.msra.mxu1 %v3395_v9  ;;  %2878 = vmatprep.mubr.msk.f32.mxu1 %vm3309_vm1, %v3310_v17 }
 0x8a1   :  { %3081 = vmatprep.subr.bf16.mxu1 %v3308_v11 }
 0x8a4   :  { %3083 = vmatpush3.bf16.msra.mxu1 %v3419_v16 }
 0x8a5   :  { %3084 = vmatprep.subr.bf16.mxu1 %v3308_v11 }
 0x96a   :  { %v1159_v32 = vpop.f32.mrb[8].mxu0 }
 0x96b   :  { %v1163_v33 = vadd.f32 %v1159_v32, %v172_v31  ;;  %v2847_v34 = vpop.f32.mrb[9].mxu0 }
 0x96d   :  { %v2554_v35 = vmul.f32 -1.442695, %v1163_v33 }
 0x96f   :  { %3215 = vpow2.f32 %v2554_v35 }
 0x972   :  { %v1050_v36 = vpop.f32.mrb[10].mxu1 }
 0x973   :  { %v3154_v37 = vadd.f32 %v3533_v1, %v1050_v36  ;;  %v2836_v38 = vpop.f32.mrb[11].mxu1 }
 0x975   :  { %v2550_v39 = vmul.f32 -1.442695, %v3154_v37 }
 0x977   :  { %3217 = vpow2.f32 %v2550_v39 }
 0x979   :  { %v3216_v41 = vpop.eup %3215 }
 0x97a   :  { %v1167_v42 = vadd.f32 1.0, %v3216_v41 }
 0x97c   :  { %3219 = vrcp.f32 %v1167_v42 }
 0x981   :  { %v3218_v44 = vpop.eup %3217 }
 0x982   :  { %v1058_v45 = vadd.f32 1.0, %v3218_v44 }
 0x984   :  { %3221 = vrcp.f32 %v1058_v45 }
 0x986   :  { %v3220_v46 = vpop.eup %3219 }
 0x987   :  { %v1170_v48 = vmul.f32 2.0, %v3220_v46  ;;  %v1172_v60 = vmul.f32 %v3220_v46, %v3583_v12  ;;  %v177_v12 = vadd.f32 %v3443_v22, %v3438_v20 }
 0x989   :  { %v2555_v51 = vadd.f32 -1.0, %v1170_v48 }
 0x98b   :  { %1174 = vrot.lane.b32.xlu0 %v2555_v51, %s3311_s22 }
 0x98e   :  { %v3222_v49 = vpop.eup %3221 }
 0x98f   :  { %v1061_v50 = vmul.f32 2.0, %v3222_v49  ;;  %v1063_v63 = vmul.f32 %v3222_v49, %v3587_v15 }
 0x991   :  { %v2551_v53 = vadd.f32 -1.0, %v1061_v50 }
 0x993   :  { %1065 = vrot.lane.b32.xlu1 %v2551_v53, %s3311_s22 }
 0x9fd   :  { %v1175_v54 = vpop.permute.xlu0 %1174 }
 0x9fe   :  { %v1177_v56 = vmul.f32 %v3220_v46, %v1175_v54 }
 0xa00   :  { %1179 = vrot.lane.b32.xlu0 %v1177_v56, %s3312_s3 }
 0xa05   :  { %v1066_v57 = vpop.permute.xlu1 %1065 }
 0xa06   :  { %v1068_v58 = vmul.f32 %v3222_v49, %v1066_v57 }
 0xa08   :  { %1070 = vrot.lane.b32.xlu1 %v1068_v58, %s3312_s3 }
 0xa72   :  { %v1180_v61 = vpop.permute.xlu0 %1179 }
 0xa73   :  { %v3626_v62 = vadd.f32 %v1180_v61, %v1172_v60 }
 0xa75   :  { %3223 = vtanh.f32 %v3626_v62 }
 0xa7a   :  { %v1071_v52 = vpop.permute.xlu1 %1070 }
 0xa7b   :  { %v3630_v0 = vadd.f32 %v1071_v52, %v1063_v63 }
 0xa7d   :  { %3225 = vtanh.f32 %v3630_v0 }
 0xa7f   :  { %v3224_v2 = vpop.eup %3223 }
 0xa80   :  { %1185 = vrot.lane.b32.xlu0 %v3224_v2, %s3311_s22 }
 0xa87   :  { %v3226_v3 = vpop.eup %3225 }
 0xa88   :  { %1076 = vrot.lane.b32.xlu1 %v3226_v3, %s3311_s22 }
 0xaf2   :  { %v1186_v4 = vpop.permute.xlu0 %1185 }
 0xaf3   :  { %v1188_v5 = vmul.f32 %v3220_v46, %v1186_v4 }
 0xaf5   :  { %1190 = vrot.lane.b32.xlu0 %v1188_v5, %s3312_s3 }
 0xafa   :  { %v1077_v6 = vpop.permute.xlu1 %1076 }
 0xafb   :  { %v3636_v7 = vmul.f32 %v3222_v49, %v1077_v6 }
 0xafd   :  { %1265 = vrot.lane.b32.xlu1 %v3636_v7, %s3312_s3 }
 0xb67   :  { %v1191_v8 = vpop.permute.xlu0 %1190 }
 0xb68   :  { %2857 = vmatmul.mubr.msk.f32.vlgmr.msra.gmra.mrb[10].mxu0 %vm219_vm2, %v1191_v8  ;;  %2879 = vmatmul.mubr.msk.f32.vlgmr.msra.gmra.mrb[12].mxu1 %vm219_vm2, %v1191_v8 }
 0xb69   :  { %3074 = vmatpush3.bf16.msra.mxu0 %v3497_v55  ;;  %2867 = vmatprep.mubr.msk.f32.mxu0 %vm3309_vm1, %v3310_v17 }
 0xb6a   :  { %3075 = vmatprep.subr.bf16.mxu0 %v3308_v11  ;;  %3086 = vmatpush3.bf16.msra.mxu1 %v3464_v43 }
 0xb6b   :  { %3087 = vmatprep.subr.bf16.mxu1 %v3308_v11  ;;  %2889 = vmatprep.mubr.msk.f32.mxu1 %vm3309_vm1, %v3310_v17 }
 0xb6d   :  { %3077 = vmatpush3.bf16.msra.mxu0 %v3508_v59 }
 0xb6e   :  { %3096 = vmatprep.subr.bf16.mxu0 %v3308_v11  ;;  %3089 = vmatpush3.bf16.msra.mxu1 %v3478_v47 }
 0xb6f   :  { %v1266_v10 = vpop.permute.xlu1 %1265  ;;  %3090 = vmatprep.subr.bf16.mxu1 %v3308_v11 }
 0xb70   :  { %2868 = vmatmul.mubr.msk.f32.vlgmr.msra.gmra.mrb[10].mxu0 %vm219_vm2, %v1266_v10 }
 0xb71   :  { %3098 = vmatpush3.bf16.msra.mxu0 %v3395_v9  ;;  %2911 = vmatprep.mubr.msk.f32.mxu0 %vm3309_vm1, %v3310_v17 }
 0xb72   :  { %3099 = vmatprep.subr.bf16.mxu0 %v3308_v11 }
 0xb75   :  { %3101 = vmatpush3.bf16.msra.mxu0 %v3419_v16 }
 0xb76   :  { %3102 = vmatprep.subr.bf16.mxu0 %v3308_v11 }
 0xc3b   :  { %v1444_v13 = vpop.f32.mrb[12].mxu1 }
 0xc3c   :  { %v1448_v14 = vadd.f32 %v1444_v13, %v177_v12  ;;  %v2880_v15 = vpop.f32.mrb[13].mxu1 }
 0xc3e   :  { %v2562_v19 = vmul.f32 -1.442695, %v1448_v14 }
 0xc40   :  { %3227 = vpow2.f32 %v2562_v19 }
 0xc43   :  { %v1335_v21 = vpop.f32.mrb[10].mxu0 }
 0xc44   :  { %v3155_v25 = vadd.f32 %v3533_v1, %v1335_v21  ;;  %v2869_v26 = vpop.f32.mrb[11].mxu0 }
 0xc46   :  { %v2558_v27 = vmul.f32 -1.442695, %v3155_v25 }
 0xc48   :  { %3229 = vpow2.f32 %v2558_v27 }
 0xc4a   :  { %v3228_v29 = vpop.eup %3227 }
 0xc4b   :  { %v1452_v30 = vadd.f32 1.0, %v3228_v29 }
 0xc4d   :  { %3231 = vrcp.f32 %v1452_v30 }
 0xc52   :  { %v3230_v31 = vpop.eup %3229 }
 0xc53   :  { %v1343_v32 = vadd.f32 1.0, %v3230_v31 }
 0xc55   :  { %3233 = vrcp.f32 %v1343_v32 }
 0xc57   :  { %v3232_v33 = vpop.eup %3231 }
 0xc58   :  { %v1455_v34 = vmul.f32 2.0, %v3232_v33  ;;  %v1457_v44 = vmul.f32 %v3232_v33, %v3626_v62  ;;  %v182_v62 = vadd.f32 %v3434_v18, %v3443_v22 }
 0xc5a   :  { %v2563_v20 = vadd.f32 -1.0, %v1455_v34 }
 0xc5c   :  { %1459 = vrot.lane.b32.xlu0 %v2563_v20, %s3311_s22 }
 0xc5f   :  { %v3234_v35 = vpop.eup %3233 }
 0xc60   :  { %v1346_v36 = vmul.f32 2.0, %v3234_v35  ;;  %v1348_v48 = vmul.f32 %v3234_v35, %v3630_v0 }
 0xc62   :  { %v2559_v37 = vadd.f32 -1.0, %v1346_v36 }
 0xc64   :  { %1350 = vrot.lane.b32.xlu1 %v2559_v37, %s3311_s22 }
 0xcce   :  { %v1460_v38 = vpop.permute.xlu0 %1459 }
 0xccf   :  { %v1462_v39 = vmul.f32 %v3232_v33, %v1460_v38 }
 0xcd1   :  { %1464 = vrot.lane.b32.xlu0 %v1462_v39, %s3312_s3 }
 0xcd6   :  { %v1351_v41 = vpop.permute.xlu1 %1350 }
 0xcd7   :  { %v1353_v42 = vmul.f32 %v3234_v35, %v1351_v41 }
 0xcd9   :  { %1355 = vrot.lane.b32.xlu1 %v1353_v42, %s3312_s3 }
 0xd43   :  { %v1465_v45 = vpop.permute.xlu0 %1464 }
 0xd44   :  { %v3669_v46 = vadd.f32 %v1465_v45, %v1457_v44 }
 0xd46   :  { %3235 = vtanh.f32 %v3669_v46 }
 0xd4b   :  { %v1356_v51 = vpop.permute.xlu1 %1355 }
 0xd4c   :  { %v3673_v49 = vadd.f32 %v1356_v51, %v1348_v48 }
 0xd4e   :  { %3237 = vtanh.f32 %v3673_v49 }
 0xd50   :  { %v3236_v50 = vpop.eup %3235 }
 0xd51   :  { %1470 = vrot.lane.b32.xlu0 %v3236_v50, %s3311_s22 }
 0xd58   :  { %v3238_v53 = vpop.eup %3237 }
 0xd59   :  { %1361 = vrot.lane.b32.xlu1 %v3238_v53, %s3311_s22 }
 0xdc3   :  { %v1471_v54 = vpop.permute.xlu0 %1470 }
 0xdc4   :  { %v1473_v56 = vmul.f32 %v3232_v33, %v1471_v54 }
 0xdc6   :  { %1475 = vrot.lane.b32.xlu0 %v1473_v56, %s3312_s3 }
 0xdcb   :  { %v1362_v57 = vpop.permute.xlu1 %1361 }
 0xdcc   :  { %v3679_v58 = vmul.f32 %v3234_v35, %v1362_v57 }
 0xdce   :  { %1550 = vrot.lane.b32.xlu1 %v3679_v58, %s3312_s3 }
 0xe38   :  { %v1476_v60 = vpop.permute.xlu0 %1475 }
 0xe39   :  { %2890 = vmatmul.mubr.msk.f32.vlgmr.msra.gmra.mrb[14].mxu1 %vm219_vm2, %v1476_v60  ;;  %2912 = vmatmul.mubr.msk.f32.vlgmr.msra.gmra.mrb[12].mxu0 %vm219_vm2, %v1476_v60 }
 0xe3a   :  { %3092 = vmatpush3.bf16.msra.mxu1 %v3497_v55  ;;  %2900 = vmatprep.mubr.msk.f32.mxu1 %vm3309_vm1, %v3310_v17 }
 0xe3b   :  { %3093 = vmatprep.subr.bf16.mxu1 %v3308_v11  ;;  %3104 = vmatpush3.bf16.msra.mxu0 %v3464_v43 }
 0xe3c   :  { %3105 = vmatprep.subr.bf16.mxu0 %v3308_v11  ;;  %2922 = vmatprep.mubr.msk.f32.mxu0 %vm3309_vm1, %v3310_v17 }
 0xe3e   :  { %3095 = vmatpush3.bf16.msra.mxu1 %v3508_v59 }
 0xe3f   :  { %3114 = vmatprep.subr.bf16.mxu1 %v3308_v11  ;;  %3107 = vmatpush3.bf16.msra.mxu0 %v3478_v47 }
 0xe40   :  { %v1551_v61 = vpop.permute.xlu1 %1550  ;;  %3108 = vmatprep.subr.bf16.mxu0 %v3308_v11 }
 0xe41   :  { %2901 = vmatmul.mubr.msk.f32.vlgmr.msra.gmra.mrb[14].mxu1 %vm219_vm2, %v1551_v61 }
 0xe42   :  { %3116 = vmatpush3.bf16.msra.mxu1 %v3395_v9  ;;  %2944 = vmatprep.mubr.msk.f32.mxu1 %vm3309_vm1, %v3310_v17 }
 0xe43   :  { %3117 = vmatprep.subr.bf16.mxu1 %v3308_v11 }
 0xe46   :  { %3119 = vmatpush3.bf16.msra.mxu1 %v3419_v16 }
 0xe47   :  { %3120 = vmatprep.subr.bf16.mxu1 %v3308_v11 }
 0xf0c   :  { %v1729_v63 = vpop.f32.mrb[12].mxu0 }
 0xf0d   :  { %v1733_v52 = vadd.f32 %v1729_v63, %v182_v62  ;;  %v2913_v0 = vpop.f32.mrb[13].mxu0 }
 0xf0f   :  { %v2570_v2 = vmul.f32 -1.442695, %v1733_v52 }
 0xf11   :  { %3239 = vpow2.f32 %v2570_v2 }
 0xf14   :  { %v1620_v3 = vpop.f32.mrb[14].mxu1 }
 0xf15   :  { %v3156_v4 = vadd.f32 %v3533_v1, %v1620_v3  ;;  %v2902_v5 = vpop.f32.mrb[15].mxu1 }
 0xf17   :  { %v2566_v6 = vmul.f32 -1.442695, %v3156_v4 }
 0xf19   :  { %3241 = vpow2.f32 %v2566_v6 }
 0xf1b   :  { %v3240_v8 = vpop.eup %3239 }
 0xf1c   :  { %v1737_v10 = vadd.f32 1.0, %v3240_v8 }
 0xf1e   :  { %3243 = vrcp.f32 %v1737_v10 }
 0xf23   :  { %v3242_v12 = vpop.eup %3241 }
 0xf24   :  { %v1628_v13 = vadd.f32 1.0, %v3242_v12 }
 0xf26   :  { %3245 = vrcp.f32 %v1628_v13 }
 0xf28   :  { %v3244_v14 = vpop.eup %3243 }
 0xf29   :  { %v1740_v15 = vmul.f32 2.0, %v3244_v14  ;;  %v1742_v31 = vmul.f32 %v3244_v14, %v3669_v46  ;;  %v187_v46 = vadd.f32 %v3443_v22, %v3447_v24 }
 0xf2b   :  { %v2571_v18 = vadd.f32 -1.0, %v1740_v15 }
 0xf2d   :  { %1744 = vrot.lane.b32.xlu0 %v2571_v18, %s3311_s22 }
 0xf30   :  { %v3246_v19 = vpop.eup %3245 }
 0xf31   :  { %v1631_v21 = vmul.f32 2.0, %v3246_v19  ;;  %v1633_v34 = vmul.f32 %v3246_v19, %v3673_v49 }
 0xf33   :  { %v2567_v25 = vadd.f32 -1.0, %v1631_v21 }
 0xf35   :  { %1635 = vrot.lane.b32.xlu1 %v2567_v25, %s3311_s22 }
 0xf9f   :  { %v1745_v26 = vpop.permute.xlu0 %1744 }
 0xfa0   :  { %v1747_v27 = vmul.f32 %v3244_v14, %v1745_v26 }
 0xfa2   :  { %1749 = vrot.lane.b32.xlu0 %v1747_v27, %s3312_s3 }
 0xfa7   :  { %v1636_v29 = vpop.permute.xlu1 %1635 }
 0xfa8   :  { %v1638_v30 = vmul.f32 %v3246_v19, %v1636_v29 }
 0xfaa   :  { %1640 = vrot.lane.b32.xlu1 %v1638_v30, %s3312_s3 }
0x1014   :  { %v1750_v32 = vpop.permute.xlu0 %1749 }
0x1015   :  { %v3712_v33 = vadd.f32 %v1750_v32, %v1742_v31  ;;  %v192_v31 = vadd.f32 %v3445_v23, %v3443_v22 }
0x1017   :  { %3247 = vtanh.f32 %v3712_v33 }
0x101c   :  { %v1641_v20 = vpop.permute.xlu1 %1640 }
0x101d   :  { %v3716_v35 = vadd.f32 %v1641_v20, %v1633_v34 }
0x101f   :  { %3249 = vtanh.f32 %v3716_v35 }
0x1021   :  { %v3248_v36 = vpop.eup %3247 }
0x1022   :  { %1755 = vrot.lane.b32.xlu0 %v3248_v36, %s3311_s22 }
0x1029   :  { %v3250_v37 = vpop.eup %3249 }
0x102a   :  { %1646 = vrot.lane.b32.xlu1 %v3250_v37, %s3311_s22 }
0x1094   :  { %v1756_v38 = vpop.permute.xlu0 %1755 }
0x1095   :  { %v1758_v39 = vmul.f32 %v3244_v14, %v1756_v38 }
0x1097   :  { %1760 = vrot.lane.b32.xlu0 %v1758_v39, %s3312_s3 }
0x109c   :  { %v1647_v41 = vpop.permute.xlu1 %1646 }
0x109d   :  { %v3722_v42 = vmul.f32 %v3246_v19, %v1647_v41 }
0x109f   :  { %1835 = vrot.lane.b32.xlu1 %v3722_v42, %s3312_s3 }
0x1109   :  { %v1761_v44 = vpop.permute.xlu0 %1760 }
0x110a   :  { %2923 = vmatmul.mubr.msk.f32.vlgmr.msra.gmra.mrb[14].mxu0 %vm219_vm2, %v1761_v44  ;;  %2945 = vmatmul.mubr.msk.f32.vlgmr.msra.gmra.mrb[16].mxu1 %vm219_vm2, %v1761_v44 }
0x110b   :  { %3110 = vmatpush3.bf16.msra.mxu0 %v3497_v55  ;;  %2933 = vmatprep.mubr.msk.f32.mxu0 %vm3309_vm1, %v3310_v17 }
0x110c   :  { %3111 = vmatprep.subr.bf16.mxu0 %v3308_v11  ;;  %3122 = vmatpush3.bf16.msra.mxu1 %v3464_v43 }
0x110d   :  { %3123 = vmatprep.subr.bf16.mxu1 %v3308_v11  ;;  %2955 = vmatprep.mubr.msk.f32.mxu1 %vm3309_vm1, %v3310_v17 }
0x110f   :  { %3113 = vmatpush3.bf16.msra.mxu0 %v3508_v59 }
0x1110   :  { %3132 = vmatprep.subr.bf16.mxu0 %v3308_v11  ;;  %3125 = vmatpush3.bf16.msra.mxu1 %v3478_v47 }
0x1111   :  { %v1836_v45 = vpop.permute.xlu1 %1835  ;;  %3126 = vmatprep.subr.bf16.mxu1 %v3308_v11 }
0x1112   :  { %2934 = vmatmul.mubr.msk.f32.vlgmr.msra.gmra.mrb[14].mxu0 %vm219_vm2, %v1836_v45 }
0x1113   :  { %3134 = vmatpush3.bf16.msra.mxu0 %v3395_v9  ;;  %2977 = vmatprep.mubr.msk.f32.mxu0 %vm3309_vm1, %v3310_v17 }
0x1114   :  { %3135 = vmatprep.subr.bf16.mxu0 %v3308_v11 }
0x1117   :  { %3137 = vmatpush3.bf16.msra.mxu0 %v3419_v16 }
0x1118   :  { %3138 = vmatprep.subr.bf16.mxu0 %v3308_v11 }
0x11dd   :  { %v2014_v48 = vpop.f32.mrb[16].mxu1 }
0x11de   :  { %v2018_v51 = vadd.f32 %v2014_v48, %v187_v46  ;;  %v2946_v49 = vpop.f32.mrb[17].mxu1 }
0x11e0   :  { %v2578_v50 = vmul.f32 -1.442695, %v2018_v51 }
0x11e2   :  { %3251 = vpow2.f32 %v2578_v50 }
0x11e5   :  { %v1905_v53 = vpop.f32.mrb[14].mxu0 }
0x11e6   :  { %v3157_v9 = vadd.f32 %v3533_v1, %v1905_v53  ;;  %v2935_v54 = vpop.f32.mrb[15].mxu0 }
0x11e8   :  { %v2574_v56 = vmul.f32 -1.442695, %v3157_v9 }
0x11ea   :  { %3253 = vpow2.f32 %v2574_v56 }
0x11ec   :  { %v3252_v57 = vpop.eup %3251 }
0x11ed   :  { %v2022_v60 = vadd.f32 1.0, %v3252_v57 }
0x11ef   :  { %3255 = vrcp.f32 %v2022_v60 }
0x11f4   :  { %v3254_v16 = vpop.eup %3253 }
0x11f5   :  { %v1913_v61 = vadd.f32 1.0, %v3254_v16 }
0x11f7   :  { %3257 = vrcp.f32 %v1913_v61 }
0x11f9   :  { %v3256_v62 = vpop.eup %3255 }
0x11fa   :  { %v2025_v63 = vmul.f32 2.0, %v3256_v62  ;;  %v2027_v8 = vmul.f32 %v3256_v62, %v3712_v33 }
0x11fc   :  { %v2579_v24 = vadd.f32 -1.0, %v2025_v63 }
0x11fe   :  { %2029 = vrot.lane.b32.xlu0 %v2579_v24, %s3311_s22 }
0x1201   :  { %v3258_v52 = vpop.eup %3257 }
0x1202   :  { %v1916_v0 = vmul.f32 2.0, %v3258_v52  ;;  %v1918_v13 = vmul.f32 %v3258_v52, %v3716_v35 }
0x1204   :  { %v2575_v2 = vadd.f32 -1.0, %v1916_v0 }
0x1206   :  { %1920 = vrot.lane.b32.xlu1 %v2575_v2, %s3311_s22 }
0x1270   :  { %v2030_v3 = vpop.permute.xlu0 %2029 }
0x1271   :  { %v2032_v4 = vmul.f32 %v3256_v62, %v2030_v3 }
0x1273   :  { %2034 = vrot.lane.b32.xlu0 %v2032_v4, %s3312_s3 }
0x1278   :  { %v1921_v5 = vpop.permute.xlu1 %1920 }
0x1279   :  { %v1923_v6 = vmul.f32 %v3258_v52, %v1921_v5 }
0x127b   :  { %1925 = vrot.lane.b32.xlu1 %v1923_v6, %s3312_s3 }
0x12e5   :  { %v2035_v10 = vpop.permute.xlu0 %2034 }
0x12e6   :  { %v2037_v12 = vadd.f32 %v2035_v10, %v2027_v8 }
0x12e8   :  { %3259 = vtanh.f32 %v2037_v12 }
0x12ed   :  { %v1926_v14 = vpop.permute.xlu1 %1925 }
0x12ee   :  { %v1928_v15 = vadd.f32 %v1926_v14, %v1918_v13 }
0x12f0   :  { %3261 = vtanh.f32 %v1928_v15 }
0x12f2   :  { %v3260_v18 = vpop.eup %3259 }
0x12f3   :  { %2040 = vrot.lane.b32.xlu0 %v3260_v18, %s3311_s22 }
0x12fa   :  { %v3262_v19 = vpop.eup %3261 }
0x12fb   :  { %1931 = vrot.lane.b32.xlu1 %v3262_v19, %s3311_s22 }
0x1365   :  { %v2041_v21 = vpop.permute.xlu0 %2040 }
0x1366   :  { %v2043_v25 = vmul.f32 %v3256_v62, %v2041_v21 }
0x1368   :  { %2045 = vrot.lane.b32.xlu0 %v2043_v25, %s3312_s3 }
0x136d   :  { %v1932_v26 = vpop.permute.xlu1 %1931 }
0x136e   :  { %v3759_v27 = vmul.f32 %v3258_v52, %v1932_v26 }
0x1370   :  { %2120 = vrot.lane.b32.xlu1 %v3759_v27, %s3312_s3 }
0x13da   :  { %v2046_v29 = vpop.permute.xlu0 %2045 }
0x13db   :  { %2956 = vmatmul.mubr.msk.f32.vlgmr.msra.gmra.mrb[18].mxu1 %vm219_vm2, %v2046_v29  ;;  %2978 = vmatmul.mubr.msk.f32.vlgmr.msra.gmra.mrb[16].mxu0 %vm219_vm2, %v2046_v29 }
0x13dc   :  { %3128 = vmatpush3.bf16.msra.mxu1 %v3497_v55  ;;  %2966 = vmatprep.mubr.msk.f32.mxu1 %vm3309_vm1, %v3310_v17 }
0x13dd   :  { %3129 = vmatprep.subr.bf16.mxu1 %v3308_v11  ;;  %3140 = vmatpush3.bf16.msra.mxu0 %v3464_v43 }
0x13de   :  { %3141 = vmatprep.subr.bf16.mxu0 %v3308_v11  ;;  %2988 = vmatprep.mubr.msk.f32.mxu0 %vm3309_vm1, %v3310_v17 }
0x13e0   :  { %3131 = vmatpush3.bf16.msra.mxu1 %v3508_v59 }
0x13e1   :  { %3143 = vmatpush3.bf16.msra.mxu0 %v3478_v47 }
0x13e2   :  { %v2121_v30 = vpop.permute.xlu1 %2120  ;;  %3144 = vmatprep.subr.bf16.mxu0 %v3308_v11 }
0x13e3   :  { %2967 = vmatmul.mubr.msk.f32.vlgmr.msra.gmra.mrb[18].mxu1 %vm219_vm2, %v2121_v30 }
0x14ae   :  { %v2299_v32 = vpop.f32.mrb[16].mxu0 }
0x14af   :  { %v2303_v33 = vadd.f32 %v2299_v32, %v192_v31  ;;  %v2979_v43 = vpop.f32.mrb[17].mxu0 }
0x14b1   :  { %v2586_v34 = vmul.f32 -1.442695, %v2303_v33 }
0x14b3   :  { %3263 = vpow2.f32 %v2586_v34 }
0x14b6   :  { %v2190_v20 = vpop.f32.mrb[18].mxu1 }
0x14b7   :  { %v3158_v35 = vadd.f32 %v3533_v1, %v2190_v20  ;;  %v2968_v36 = vpop.f32.mrb[19].mxu1 }
0x14b9   :  { %v2582_v37 = vmul.f32 -1.442695, %v3158_v35  ;;  %v2536_v35 = vld [vmem:[#allocation3] ss:$0 sm:$0xff] }
0x14bb   :  { %3265 = vpow2.f32 %v2582_v37 }
0x14bd   :  { %v3264_v47 = vpop.eup %3263 }
0x14be   :  { %v2307_v38 = vadd.f32 1.0, %v3264_v47 }
0x14c0   :  { %3267 = vrcp.f32 %v2307_v38 }
0x14c5   :  { %v3266_v39 = vpop.eup %3265 }
0x14c6   :  { %v2198_v41 = vadd.f32 1.0, %v3266_v39 }
0x14c8   :  { %3269 = vrcp.f32 %v2198_v41 }
0x14ca   :  { %v3268_v44 = vpop.eup %3267 }
0x14cb   :  { %v2310_v45 = vmul.f32 2.0, %v3268_v44  ;;  %v2312_v9 = vmul.f32 %v3268_v44, %v2037_v12 }
0x14cd   :  { %v2587_v22 = vadd.f32 -1.0, %v2310_v45 }
0x14cf   :  { %2314 = vrot.lane.b32.xlu0 %v2587_v22, %s3311_s22 }
0x14d2   :  { %v3270_v23 = vpop.eup %3269 }
0x14d3   :  { %v2201_v46 = vmul.f32 2.0, %v3270_v23  ;;  %v2203_v57 = vmul.f32 %v3270_v23, %v1928_v15 }
0x14d5   :  { %v2583_v48 = vadd.f32 -1.0, %v2201_v46 }
0x14d7   :  { %2205 = vrot.lane.b32.xlu1 %v2583_v48, %s3311_s22 }
0x1541   :  { %v2315_v51 = vpop.permute.xlu0 %2314 }
0x1542   :  { %v2317_v49 = vmul.f32 %v3268_v44, %v2315_v51 }
0x1544   :  { %2319 = vrot.lane.b32.xlu0 %v2317_v49, %s3312_s3 }
0x1549   :  { %v2206_v50 = vpop.permute.xlu1 %2205 }
0x154a   :  { %v2208_v53 = vmul.f32 %v3270_v23, %v2206_v50 }
0x154c   :  { %2210 = vrot.lane.b32.xlu1 %v2208_v53, %s3312_s3 }
0x15b6   :  { %v2320_v54 = vpop.permute.xlu0 %2319 }
0x15b7   :  { %v2322_v56 = vadd.f32 %v2320_v54, %v2312_v9 }
0x15b9   :  { %3271 = vtanh.f32 %v2322_v56 }
0x15be   :  { %v2211_v60 = vpop.permute.xlu1 %2210 }
0x15bf   :  { %v2213_v16 = vadd.f32 %v2211_v60, %v2203_v57 }
0x15c1   :  { %3273 = vtanh.f32 %v2213_v16 }
0x15c3   :  { %v3272_v61 = vpop.eup %3271 }
0x15c4   :  { %2325 = vrot.lane.b32.xlu0 %v3272_v61, %s3311_s22 }
0x15cb   :  { %v3274_v62 = vpop.eup %3273 }
0x15cc   :  { %2216 = vrot.lane.b32.xlu1 %v3274_v62, %s3311_s22 }
0x1636   :  { %v2326_v63 = vpop.permute.xlu0 %2325 }
0x1637   :  { %v2328_v24 = vmul.f32 %v3268_v44, %v2326_v63 }
0x1639   :  { %2330 = vrot.lane.b32.xlu0 %v2328_v24, %s3312_s3 }
0x163e   :  { %v2217_v52 = vpop.permute.xlu1 %2216 }
0x163f   :  { %v2219_v0 = vmul.f32 %v3270_v23, %v2217_v52 }
0x1641   :  { %2405 = vrot.lane.b32.xlu1 %v2219_v0, %s3312_s3 }
0x16ab   :  { %v2331_v2 = vpop.permute.xlu0 %2330 }
0x16ac   :  { %2989 = vmatmul.mubr.msk.f32.vlgmr.msra.gmra.mrb[18].mxu0 %vm219_vm2, %v2331_v2 }
0x16ad   :  { %3146 = vmatpush3.bf16.msra.mxu0 %v3497_v55  ;;  %2999 = vmatprep.mubr.msk.f32.mxu0 %vm3309_vm1, %v3310_v17 }
0x16ae   :  { %3147 = vmatprep.subr.bf16.mxu0 %v3308_v11  ;;  %v2535_v11 = vld [vmem:[%s3863_s7] ss:$0 sm:$0xff] }
0x16b1   :  { %3149 = vmatpush3.bf16.msra.mxu0 %v3508_v59 }
0x16b3   :  { %v2406_v3 = vpop.permute.xlu1 %2405 }
0x16b4   :  { %3000 = vmatmul.mubr.msk.f32.vlgmr.msra.gmra.mrb[18].mxu0 %vm219_vm2, %v2406_v3 }
0x1787   :  { %v2475_v4 = vpop.f32.mrb[18].mxu0 }
0x1788   :  { %v3159_v5 = vadd.f32 %v3533_v1, %v2475_v4  ;;  %v3001_v6 = vpop.f32.mrb[19].mxu0 }
0x178a   :  { %v2590_v8 = vmul.f32 -1.442695, %v3159_v5 }
0x178c   :  { %3275 = vpow2.f32 %v2590_v8 }
0x1796   :  { %v3276_v10 = vpop.eup %3275 }
0x1797   :  { %v2483_v12 = vadd.f32 1.0, %v3276_v10 }
0x1799   :  { %3277 = vrcp.f32 %v2483_v12 }
0x17a3   :  { %v3278_v55 = vpop.eup %3277 }
0x17a4   :  { %v2486_v13 = vmul.f32 2.0, %v3278_v55  ;;  %v2488_v18 = vmul.f32 %v3278_v55, %v2213_v16 }
0x17a6   :  { %v2591_v14 = vadd.f32 -1.0, %v2486_v13 }
0x17a8   :  { %2490 = vrot.lane.b32.xlu0 %v2591_v14, %s3311_s22 }
0x17ac   :  { %501 = vrot.lane.b32.xlu0 %v2535_v11, %s3313_s20 }
0x181a   :  { %v2491_v17 = vpop.permute.xlu0 %2490 }
0x181b   :  { %v2493_v59 = vmul.f32 %v3278_v55, %v2491_v17 }
0x181d   :  { %2495 = vrot.lane.b32.xlu1 %v2493_v59, %s3312_s3 }
0x181e   :  { %v502_v1 = vpop.permute.xlu0 %501 }
0x181f   :  { %v504_v15 = vmul.f32 %v502_v1, %v3550_v40  ;;  %v795_v30 = vmul.f32 %v3593_v28, %v502_v1  ;;  %v1080_v31 = vmul.f32 %v3636_v7, %v502_v1  ;;  %v1650_v40 = vmul.f32 %v3722_v42, %v502_v1 }
0x1820   :  { %v1935_v32 = vmul.f32 %v3759_v27, %v502_v1  ;;  %v2220_v33 = vmul.f32 %v2219_v0, %v502_v1  ;;  %v1365_v44 = vmul.f32 %v3679_v58, %v502_v1 }
0x1821   :  { %506 = vrot.lane.b32.xlu1 %v504_v15, %s3312_s3 }
0x188f   :  { %v2496_v19 = vpop.permute.xlu1 %2495 }
0x1890   :  { %v2498_v21 = vadd.f32 %v2496_v19, %v2488_v18 }
0x1892   :  { %3279 = vtanh.f32 %v2498_v21 }
0x1893   :  { %v507_v25 = vpop.permute.xlu1 %506 }
0x1894   :  { %v509_v26 = vsel %vm219_vm2, %v507_v25, 0.0 }
0x1895   :  { %510 = vadd.xlane.f32.xlu0 %v509_v26 }
0x189c   :  { %v3280_v29 = vpop.eup %3279 }
0x189d   :  { %2501 = vrot.lane.b32.xlu1 %v3280_v29, %s3311_s22 }
0x18a1   :  { %797 = vrot.lane.b32.xlu1 %v795_v30, %s3312_s3 }
0x18ab   :  { %1082 = vrot.lane.b32.xlu0 %v1080_v31, %s3312_s3 }
0x18af   :  { %1652 = vrot.lane.b32.xlu0 %v1650_v40, %s3312_s3 }
0x18b3   :  { %1937 = vrot.lane.b32.xlu0 %v1935_v32, %s3312_s3 }
0x18b7   :  { %2222 = vrot.lane.b32.xlu0 %v2220_v33, %s3312_s3 }
0x190f   :  { %v2502_v43 = vpop.permute.xlu1 %2501 }
0x1910   :  { %v2504_v34 = vmul.f32 %v3278_v55, %v2502_v43 }
0x1912   :  { %v2505_v28 = vmul.f32 %v2504_v34, %v502_v1 }
0x1913   :  { %v798_v20 = vpop.permute.xlu1 %797 }
0x1914   :  { %2507 = vrot.lane.b32.xlu0 %v2505_v28, %s3312_s3  ;;  %v800_v7 = vsel %vm219_vm2, %v798_v20, 0.0 }
0x1915   :  { %801 = vadd.xlane.f32.xlu1 %v800_v7 }
0x1922   :  { %v511_v42 = vpop.xlane.xlu0 %510 }
0x1923   :  { %v518_v36 = vadd.f32 %v2536_v35, %v511_v42 }
0x1925   :  { %520 = vst.msk [vmem:[%s3865_s9] sm:$0xff] %vm519_vm3, %v518_v36 }
0x1926   :  { %v1083_v27 = vpop.permute.xlu0 %1082 }
0x1927   :  { %v1085_v37 = vsel %vm219_vm2, %v1083_v27, 0.0 }
0x1928   :  { %1086 = vadd.xlane.f32.xlu1 %v1085_v37 }
0x192a   :  { %v1653_v47 = vpop.permute.xlu0 %1652 }
0x192b   :  { %v1655_v38 = vsel %vm219_vm2, %v1653_v47, 0.0 }
0x192e   :  { %v1938_v39 = vpop.permute.xlu0 %1937 }
0x192f   :  { %v1940_v41 = vsel %vm219_vm2, %v1938_v39, 0.0 }
0x1932   :  { %v2223_v45 = vpop.permute.xlu0 %2222 }
0x1933   :  { %1656 = vadd.xlane.f32.xlu0 %v1655_v38  ;;  %v2225_v53 = vsel %vm219_vm2, %v2223_v45, 0.0 }
0x1937   :  { %1941 = vadd.xlane.f32.xlu0 %v1940_v41 }
0x1939   :  { %1367 = vrot.lane.b32.xlu1 %v1365_v44, %s3312_s3 }
0x1986   :  { %v2508_v22 = vpop.permute.xlu0 %2507 }
0x1987   :  { %v2510_v23 = vsel %vm219_vm2, %v2508_v22, 0.0 }
0x1988   :  { %2511 = vadd.xlane.f32.xlu0 %v2510_v23 }
0x19a2   :  { %v802_v46 = vpop.xlane.xlu1 %801 }
0x19a3   :  { %v803_v48 = vadd.f32 %v2536_v35, %v802_v46 }
0x19a5   :  { %2544 = vst.msk [vmem:[%s3865_s9 + $0x8] sm:$0xff] %vm519_vm3, %v803_v48 }
0x19b5   :  { %v1087_v51 = vpop.xlane.xlu1 %1086 }
0x19b6   :  { %v1088_v49 = vadd.f32 %v2536_v35, %v1087_v51 }
0x19b8   :  { %2552 = vst.msk [vmem:[%s3865_s9 + $0x10] sm:$0xff] %vm519_vm3, %v1088_v49 }
0x19b9   :  { %v1368_v58 = vpop.permute.xlu1 %1367 }
0x19ba   :  { %v1370_v50 = vsel %vm219_vm2, %v1368_v58, 0.0 }
0x19bb   :  { %1371 = vadd.xlane.f32.xlu1 %v1370_v50 }
0x19bf   :  { %2226 = vadd.xlane.f32.xlu1 %v2225_v53 }
0x19c0   :  { %v1657_v9 = vpop.xlane.xlu0 %1656 }
0x19c1   :  { %v1658_v54 = vadd.f32 %v2536_v35, %v1657_v9 }
0x19c3   :  { %2568 = vst.msk [vmem:[%s3865_s9 + $0x20] sm:$0xff] %vm519_vm3, %v1658_v54 }
0x19c4   :  { %v1942_v56 = vpop.xlane.xlu0 %1941 }
0x19c5   :  { %v1943_v57 = vadd.f32 %v2536_v35, %v1942_v56 }
0x19c7   :  { %2576 = vst.msk [vmem:[%s3865_s9 + $0x28] sm:$0xff] %vm519_vm3, %v1943_v57 }
0x1a15   :  { %v2512_v60 = vpop.xlane.xlu0 %2511 }
0x1a16   :  { %v2513_v16 = vadd.f32 %v2536_v35, %v2512_v60 }
0x1a18   :  { %2514 = vst.msk [vmem:[%s3865_s9 + $0x38] sm:$0xff] %vm519_vm3, %v2513_v16 }
0x1a48   :  { %v1372_v61 = vpop.xlane.xlu1 %1371 }
0x1a49   :  { %v1373_v62 = vadd.f32 %v2536_v35, %v1372_v61 }
0x1a4b   :  { %2560 = vst.msk [vmem:[%s3865_s9 + $0x18] sm:$0xff] %vm519_vm3, %v1373_v62 }
0x1a4c   :  { %v2227_v63 = vpop.xlane.xlu1 %2226 }
0x1a4d   :  { %v2228_v24 = vadd.f32 %v2536_v35, %v2227_v63 }
0x1a4f   :  { %2584 = vst.msk [vmem:[%s3865_s9 + $0x30] sm:$0xff] %vm519_vm3, %v2228_v24 }
0x1a50   :  { %2519 = vsyncpa [#allocation5], 1 }

</bundles_post_ra>
